<compile_context>
chip_gen: v6e
topology: v6e:2x2x1
jax: 0.10.0
libtpu: 0.0.40
codegen_flags: <defaults>
</compile_context>

<pallas_src>
import functools

import jax
import jax.numpy as jnp
from jax.experimental import pallas as pl
from jax.experimental.pallas import tpu as pltpu

EPS = 1e-3


def fused_conv_bn_kernel(x_ref, w_ref, gamma_ref, beta_ref, o_ref,
                         sum_ref, ssq_ref, *, inv_m, tm):
    b = pl.program_id(0)          # batch index
    t = pl.program_id(1)          # spatial-tile index

    @pl.when(jnp.logical_and(b == 0, t == 0))
    def _():
        sum_ref[...] = jnp.zeros_like(sum_ref)
        ssq_ref[...] = jnp.zeros_like(ssq_ref)

    # 1x1 conv for this tile: (Cout, Cin) @ (Cin, tm) -> (Cout, tm) on the MXU.
    y = jnp.dot(w_ref[...], x_ref[0], preferred_element_type=jnp.float32)

    # One-sweep per-channel batch statistics (lane-axis reduce on the XLU).
    sum_ref[...] += jnp.sum(y, axis=1, keepdims=True)
    ssq_ref[...] += jnp.sum(y * y, axis=1, keepdims=True)

    # Stash the conv tile into the VMEM-resident output block.
    start = pl.multiple_of(t * tm, tm)
    o_ref[b, :, pl.ds(start, tm)] = y

    # Last grid step: finalize statistics and normalize everything in place.
    @pl.when(jnp.logical_and(b == pl.num_programs(0) - 1,
                             t == pl.num_programs(1) - 1))
    def _():
        mean = sum_ref[...] * inv_m                        # (Cout, 1)
        var = ssq_ref[...] * inv_m - mean * mean           # biased variance
        scale = gamma_ref[...] * jax.lax.rsqrt(var + EPS)  # (Cout, 1)
        shift = beta_ref[...] - mean * scale
        o_ref[...] = o_ref[...] * scale[None, :, :] + shift[None, :, :]


def _pick_tile(hw):
    for cand in (2048, 1024, 512, 256, 128):
        if hw % cand == 0:
            return cand
    return hw   # single full-width tile (block == full array dim is allowed)


def conv_bn_forward(x_nchw, w_oihw, gamma, beta):
    n, c_in, h, w = x_nchw.shape
    c_out = w_oihw.shape[0]
    hw = h * w
    tm = _pick_tile(hw)
    n_tiles = hw // tm

    x3 = x_nchw.reshape(n, c_in, hw)                        # free reshape (NCHW-native)
    w_mat = w_oihw.reshape(c_out, c_in)                     # (Cout, Cin)
    gamma2 = gamma.reshape(c_out, 1).astype(jnp.float32)
    beta2 = beta.reshape(c_out, 1).astype(jnp.float32)

    kernel = functools.partial(fused_conv_bn_kernel,
                               inv_m=1.0 / float(n * hw), tm=tm)

    out3 = pl.pallas_call(
        kernel,
        out_shape=jax.ShapeDtypeStruct((n, c_out, hw), jnp.float32),
        grid_spec=pltpu.PrefetchScalarGridSpec(
            num_scalar_prefetch=0,
            grid=(n, n_tiles),
            in_specs=[
                pl.BlockSpec((1, c_in, tm), lambda b, t: (b, 0, t)),
                pl.BlockSpec((c_out, c_in), lambda b, t: (0, 0)),
                pl.BlockSpec((c_out, 1), lambda b, t: (0, 0)),
                pl.BlockSpec((c_out, 1), lambda b, t: (0, 0)),
            ],
            # Constant block index => whole output stays resident in VMEM and
            # is written back to HBM exactly once, after normalization.
            out_specs=pl.BlockSpec((n, c_out, hw), lambda b, t: (0, 0, 0)),
            scratch_shapes=[pltpu.VMEM((c_out, 1), jnp.float32),
                            pltpu.VMEM((c_out, 1), jnp.float32)],
        ),
        compiler_params=pltpu.CompilerParams(
            # Stats scratch + resident output are carried across both axes.
            dimension_semantics=("arbitrary", "arbitrary")),
    )(x3, w_mat, gamma2, beta2)

    return out3.reshape(n, c_out, h, w)


def reference(x_nchw, w_oihw, gamma, beta):
    """Pure-JAX reference mirroring the PyTorch forward (training-mode BN)."""
    y = jax.lax.conv_general_dilated(
        x_nchw, w_oihw, (1, 1), 'VALID',
        dimension_numbers=('NCHW', 'OIHW', 'NCHW'))
    mean = jnp.mean(y, axis=(0, 2, 3), keepdims=True)
    var = jnp.mean((y - mean) ** 2, axis=(0, 2, 3), keepdims=True)
    return ((y - mean) * jax.lax.rsqrt(var + EPS)
            * gamma[None, :, None, None] + beta[None, :, None, None])


# TODO(synk): PyTorch training-mode BatchNorm2d also updates running_mean /
# running_var buffers; the module's forward only returns the activation, so the
# running-stat update is not emitted here.

if __name__ == "__main__":
    key = jax.random.PRNGKey(0)
    k1, k2, k3, k4 = jax.random.split(key, 4)

    # Cin=192 / Cout=64 are fixed by the Conv2d weights; batch/spatial kept
    # small (spec input was (1, 192, 25, 25)).
    N, C_IN, H, W, C_OUT = 2, 192, 32, 32, 64

    x = jax.random.normal(k1, (N, C_IN, H, W), dtype=jnp.float32)
    w = jax.random.normal(k2, (C_OUT, C_IN, 1, 1), dtype=jnp.float32) * 0.05
    gamma = 1.0 + 0.1 * jax.random.normal(k3, (C_OUT,), dtype=jnp.float32)
    beta = 0.1 * jax.random.normal(k4, (C_OUT,), dtype=jnp.float32)

    out = jax.block_until_ready(conv_bn_forward(x, w, gamma, beta))

    ref = reference(x, w, gamma, beta)
    assert out.shape == (N, C_OUT, H, W)
    max_err = float(jnp.max(jnp.abs(out - ref)))
    assert jnp.allclose(out, ref, atol=1e-3, rtol=1e-3), f"max abs err = {max_err}"

    print("KERNEL_OK")
</pallas_src>

<mosaic_0001>
module attributes {stable_mosaic.version = 11 : i64} {
  func.func @fused_conv_bn_kernel(%arg0: i32, %arg1: i32, %arg2: memref<1x192x1024xf32, #tpu.memory_space<vmem>>, %arg3: memref<64x192xf32, #tpu.memory_space<vmem>>, %arg4: memref<64x1xf32, #tpu.memory_space<vmem>>, %arg5: memref<64x1xf32, #tpu.memory_space<vmem>>, %arg6: memref<2x64x1024xf32, #tpu.memory_space<vmem>>, %arg7: memref<64x1xf32, #tpu.memory_space<vmem>>, %arg8: memref<64x1xf32, #tpu.memory_space<vmem>>) attributes {dimension_semantics = [#tpu.dimension_semantics<arbitrary>, #tpu.dimension_semantics<arbitrary>], iteration_bounds = array<i64: 2, 1>, scalar_prefetch = 0 : i64, scratch_operands = 2 : i64, tpu.core_type = #tpu.core_type<tc>, window_params = [{transform_indices = @transform_0, window_bounds = array<i64: 1, 192, 1024>}, {pipeline_mode = #tpu.pipeline_mode<synchronous>, transform_indices = @transform_1, window_bounds = array<i64: 64, 192>}, {pipeline_mode = #tpu.pipeline_mode<synchronous>, transform_indices = @transform_2, window_bounds = array<i64: 64, 1>}, {pipeline_mode = #tpu.pipeline_mode<synchronous>, transform_indices = @transform_3, window_bounds = array<i64: 64, 1>}, {pipeline_mode = #tpu.pipeline_mode<synchronous>, transform_indices = @transform_4, window_bounds = array<i64: 2, 64, 1024>}]} {
    %c0_i32 = arith.constant 0 : i32
    %0 = arith.cmpi eq, %arg0, %c0_i32 : i32
    %c0_i32_0 = arith.constant 0 : i32
    %1 = arith.cmpi eq, %arg1, %c0_i32_0 : i32
    %2 = arith.andi %0, %1 : i1
    %3 = arith.extui %2 : i1 to i32
    %c0_i32_1 = arith.constant 0 : i32
    %4 = arith.cmpi ne, %3, %c0_i32_1 : i32
    scf.if %4 {
      %cst_19 = arith.constant 0.000000e+00 : f32
      %32 = vector.broadcast %cst_19 : f32 to vector<64x1xf32>
      %c0_20 = arith.constant 0 : index
      %c0_21 = arith.constant 0 : index
      %33 = vector.load %arg7[%c0_20, %c0_21] : memref<64x1xf32, #tpu.memory_space<vmem>>, vector<64x1xf32>
      tpu.vector_store %arg7[%c0_20, %c0_21], %32 {strides = array<i32>} : memref<64x1xf32, #tpu.memory_space<vmem>>, vector<64x1xf32>,
      %cst_22 = arith.constant 0.000000e+00 : f32
      %34 = vector.broadcast %cst_22 : f32 to vector<64x1xf32>
      %c0_23 = arith.constant 0 : index
      %c0_24 = arith.constant 0 : index
      %35 = vector.load %arg8[%c0_23, %c0_24] : memref<64x1xf32, #tpu.memory_space<vmem>>, vector<64x1xf32>
      tpu.vector_store %arg8[%c0_23, %c0_24], %34 {strides = array<i32>} : memref<64x1xf32, #tpu.memory_space<vmem>>, vector<64x1xf32>,
    } else {
    }
    %c0 = arith.constant 0 : index
    %c0_2 = arith.constant 0 : index
    %5 = vector.load %arg3[%c0, %c0_2] : memref<64x192xf32, #tpu.memory_space<vmem>>, vector<64x192xf32>
    %c0_3 = arith.constant 0 : index
    %c0_4 = arith.constant 0 : index
    %c0_5 = arith.constant 0 : index
    %6 = vector.load %arg2[%c0_3, %c0_4, %c0_5] : memref<1x192x1024xf32, #tpu.memory_space<vmem>>, vector<1x192x1024xf32>
    %7 = vector.shape_cast %6 : vector<1x192x1024xf32> to vector<192x1024xf32>
    %cst = arith.constant dense<0.000000e+00> : vector<64x1024xf32>
    %8 = tpu.matmul %5, %7, %cst {dimension_numbers = #tpu.dot_dimension_numbers<[1], [0], [0], [1], [0, 0, 1, 1], [], []>} : vector<64x192xf32>, vector<192x1024xf32>, vector<64x1024xf32> -> vector<64x1024xf32>
    %c0_6 = arith.constant 0 : index
    %c0_7 = arith.constant 0 : index
    %9 = vector.load %arg7[%c0_6, %c0_7] : memref<64x1xf32, #tpu.memory_space<vmem>>, vector<64x1xf32>
    %cst_8 = arith.constant dense<0.000000e+00> : vector<64xf32>
    %10 = vector.multi_reduction <add>, %8, %cst_8 [1] : vector<64x1024xf32> to vector<64xf32>
    %11 = vector.shape_cast %10 : vector<64xf32> to vector<64x1xf32>
    %12 = arith.addf %9, %11 : vector<64x1xf32>
    %c0_9 = arith.constant 0 : index
    %c0_10 = arith.constant 0 : index
    %13 = vector.load %arg7[%c0_9, %c0_10] : memref<64x1xf32, #tpu.memory_space<vmem>>, vector<64x1xf32>
    tpu.vector_store %arg7[%c0_9, %c0_10], %12 {strides = array<i32>} : memref<64x1xf32, #tpu.memory_space<vmem>>, vector<64x1xf32>,
    %c0_11 = arith.constant 0 : index
    %c0_12 = arith.constant 0 : index
    %14 = vector.load %arg8[%c0_11, %c0_12] : memref<64x1xf32, #tpu.memory_space<vmem>>, vector<64x1xf32>
    %15 = arith.mulf %8, %8 : vector<64x1024xf32>
    %cst_13 = arith.constant dense<0.000000e+00> : vector<64xf32>
    %16 = vector.multi_reduction <add>, %15, %cst_13 [1] : vector<64x1024xf32> to vector<64xf32>
    %17 = vector.shape_cast %16 : vector<64xf32> to vector<64x1xf32>
    %18 = arith.addf %14, %17 : vector<64x1xf32>
    %c0_14 = arith.constant 0 : index
    %c0_15 = arith.constant 0 : index
    %19 = vector.load %arg8[%c0_14, %c0_15] : memref<64x1xf32, #tpu.memory_space<vmem>>, vector<64x1xf32>
    tpu.vector_store %arg8[%c0_14, %c0_15], %18 {strides = array<i32>} : memref<64x1xf32, #tpu.memory_space<vmem>>, vector<64x1xf32>,
    %c1024_i32 = arith.constant 1024 : i32
    %20 = arith.muli %arg1, %c1024_i32 : i32
    %21 = tpu.assume_multiple %20, 1024 : i32
    %22 = arith.index_cast %arg0 : i32 to index
    %c0_16 = arith.constant 0 : index
    %23 = arith.index_cast %21 : i32 to index
    %24 = vector.load %arg6[%22, %c0_16, %23] : memref<2x64x1024xf32, #tpu.memory_space<vmem>>, vector<1x64x1024xf32>
    %25 = vector.shape_cast %24 : vector<1x64x1024xf32> to vector<64x1024xf32>
    %26 = vector.shape_cast %8 : vector<64x1024xf32> to vector<1x64x1024xf32>
    tpu.vector_store %arg6[%22, %c0_16, %23], %26 {strides = array<i32>} : memref<2x64x1024xf32, #tpu.memory_space<vmem>>, vector<1x64x1024xf32>,
    %c1_i32 = arith.constant 1 : i32
    %27 = arith.cmpi eq, %arg0, %c1_i32 : i32
    %c0_i32_17 = arith.constant 0 : i32
    %28 = arith.cmpi eq, %arg1, %c0_i32_17 : i32
    %29 = arith.andi %27, %28 : i1
    %30 = arith.extui %29 : i1 to i32
    %c0_i32_18 = arith.constant 0 : i32
    %31 = arith.cmpi ne, %30, %c0_i32_18 : i32
    scf.if %31 {
      %c0_19 = arith.constant 0 : index
      %c0_20 = arith.constant 0 : index
      %32 = vector.load %arg7[%c0_19, %c0_20] : memref<64x1xf32, #tpu.memory_space<vmem>>, vector<64x1xf32>
      %cst_21 = arith.constant 4.8828125E-4 : f32
      %33 = vector.broadcast %cst_21 : f32 to vector<64x1xf32>
      %34 = arith.mulf %32, %33 : vector<64x1xf32>
      %c0_22 = arith.constant 0 : index
      %c0_23 = arith.constant 0 : index
      %35 = vector.load %arg8[%c0_22, %c0_23] : memref<64x1xf32, #tpu.memory_space<vmem>>, vector<64x1xf32>
      %cst_24 = arith.constant 4.8828125E-4 : f32
      %36 = vector.broadcast %cst_24 : f32 to vector<64x1xf32>
      %37 = arith.mulf %35, %36 : vector<64x1xf32>
      %38 = arith.mulf %34, %34 : vector<64x1xf32>
      %39 = arith.subf %37, %38 : vector<64x1xf32>
      %c0_25 = arith.constant 0 : index
      %c0_26 = arith.constant 0 : index
      %40 = vector.load %arg4[%c0_25, %c0_26] : memref<64x1xf32, #tpu.memory_space<vmem>>, vector<64x1xf32>
      %cst_27 = arith.constant 1.000000e-03 : f32
      %41 = vector.broadcast %cst_27 : f32 to vector<64x1xf32>
      %42 = arith.addf %39, %41 : vector<64x1xf32>
      %43 = math.rsqrt %42 : vector<64x1xf32>
      %44 = arith.mulf %40, %43 : vector<64x1xf32>
      %c0_28 = arith.constant 0 : index
      %c0_29 = arith.constant 0 : index
      %45 = vector.load %arg5[%c0_28, %c0_29] : memref<64x1xf32, #tpu.memory_space<vmem>>, vector<64x1xf32>
      %46 = arith.mulf %34, %44 : vector<64x1xf32>
      %47 = arith.subf %45, %46 : vector<64x1xf32>
      %c0_30 = arith.constant 0 : index
      %c0_31 = arith.constant 0 : index
      %c0_32 = arith.constant 0 : index
      %48 = vector.load %arg6[%c0_30, %c0_31, %c0_32] : memref<2x64x1024xf32, #tpu.memory_space<vmem>>, vector<2x64x1024xf32>
      %49 = vector.shape_cast %44 : vector<64x1xf32> to vector<1x64x1xf32>
      %50 = vector.broadcast %49 : vector<1x64x1xf32> to vector<2x64x1024xf32>
      %51 = arith.mulf %48, %50 : vector<2x64x1024xf32>
      %52 = vector.shape_cast %47 : vector<64x1xf32> to vector<1x64x1xf32>
      %53 = vector.broadcast %52 : vector<1x64x1xf32> to vector<2x64x1024xf32>
      %54 = arith.addf %51, %53 : vector<2x64x1024xf32>
      %c0_33 = arith.constant 0 : index
      %c0_34 = arith.constant 0 : index
      %c0_35 = arith.constant 0 : index
      %55 = vector.load %arg6[%c0_33, %c0_34, %c0_35] : memref<2x64x1024xf32, #tpu.memory_space<vmem>>, vector<2x64x1024xf32>
      tpu.vector_store %arg6[%c0_33, %c0_34, %c0_35], %54 {strides = array<i32>} : memref<2x64x1024xf32, #tpu.memory_space<vmem>>, vector<2x64x1024xf32>,
    } else {
    }
    return
  }
  func.func @transform_0(%arg0: i32, %arg1: i32) -> (i32, i32, i32) {
    %c0_i32 = arith.constant 0 : i32
    %c0_i32_0 = arith.constant 0 : i32
    return %arg0, %c0_i32, %arg1 : i32, i32, i32
  }
  func.func @transform_1(%arg0: i32, %arg1: i32) -> (i32, i32) {
    %c0_i32 = arith.constant 0 : i32
    %c0_i32_0 = arith.constant 0 : i32
    %c0_i32_1 = arith.constant 0 : i32
    return %c0_i32, %c0_i32_0 : i32, i32
  }
  func.func @transform_2(%arg0: i32, %arg1: i32) -> (i32, i32) {
    %c0_i32 = arith.constant 0 : i32
    %c0_i32_0 = arith.constant 0 : i32
    %c0_i32_1 = arith.constant 0 : i32
    return %c0_i32, %c0_i32_0 : i32, i32
  }
  func.func @transform_3(%arg0: i32, %arg1: i32) -> (i32, i32) {
    %c0_i32 = arith.constant 0 : i32
    %c0_i32_0 = arith.constant 0 : i32
    %c0_i32_1 = arith.constant 0 : i32
    return %c0_i32, %c0_i32_0 : i32, i32
  }
  func.func @transform_4(%arg0: i32, %arg1: i32) -> (i32, i32, i32) {
    %c0_i32 = arith.constant 0 : i32
    %c0_i32_0 = arith.constant 0 : i32
    %c0_i32_1 = arith.constant 0 : i32
    %c0_i32_2 = arith.constant 0 : i32
    return %c0_i32, %c0_i32_0, %c0_i32_1 : i32, i32, i32
  }
}

</mosaic_0001>

<bundles_post_ra>
// kernel: tpu_custom_call.1
= control target key start
LH: loop header
LB: loop body
LE: loop exit
PB: predicated region body
PF: predicated region fallthrough
CT: control target
= control target key end

     0   :  { %9 = vsyncpa [#allocation5], 0  ;;  %s3539_s0 = inlined_call_operand.hbm [shape: f32[2,192,1024], index: 0, kind: input, shape index: {}]   ;;  %s3540_s1 = inlined_call_operand.hbm [shape: f32[64,192], index: 1, kind: input, shape index: {}]   ;;  %s3541_s2 = inlined_call_operand.vmem [shape: f32[64,1], index: 2, kind: input, shape index: {}]   ;;  %s3542_s3 = inlined_call_operand.vmem [shape: f32[64,1], index: 3, kind: input, shape index: {}]   ;;  %s3543_s4 = inlined_call_operand.hbm [shape: f32[2,64,1024], index: 4, kind: output, shape index: {}]  }
   0x1   :  { %11 = vsyncpa [#allocation5 + $0x1], 0 }
   0x2   :  { %12 = vsyncpa [#allocation8], 0 }
   0x3   :  { %13 = vsyncpa [#allocation6], 0  ;;  %s2384_s15 = smov 0   ;;  %s2386_s16 = smov 0  }
   0x4   :  { %s2388_s17 = smov 0   ;;  %s2390_s18 = smov 0  }
   0x5   :  { %s2392_s19 = smov 0   ;;  %s2394_s20 = smov 0  }
   0x6 LB: > { %s2058_s21 = sadd.s32 4294967295, %s2346_s20   ;;  %p53_p0 = scmp.ne.s32.totalorder %s2330_s16, %s2326_s15  ;;  %s2346_s20 = sphi %s2394_s20, %s19_s20   ;;  %s2342_s19 = sphi %s2392_s19, %s3648_s19   ;;  %s2338_s18 = sphi %s2390_s18, %s3647_s18   ;;  %s2334_s17 = sphi %s2388_s17, %s3646_s17   ;;  %s2330_s16 = sphi %s2386_s16, %s3645_s16   ;;  %s2326_s15 = sphi %s2384_s15, %s3644_s15  }
   0x7   : > { %p2416_p1 = scmp.eq.s32.totalorder %s2058_s21, 0  ;;  %p2059_p2 = scmp.ge.s32.totalorder %s2346_s20, 1 }
   0x8   : > { %p148_p3 = scmp.lt.s32.totalorder %s2346_s20, 3  ;;  %s2348_s25 = smov [#allocation7]  }
   0x9   : > { %p2424_p4 = por %p2416_p1, %p53_p0  ;;  %s160_s26 = sshll.u32 %s2348_s25, 4  ;;  %s161_s26 = int_to_ptr.vmem [resolvable:$true] %s160_s26 }
   0xa   : > { %p2428_p5 = pnand %p2059_p2, %p148_p3  ;;  %s31_s28 = sadd.s32 1, %s2342_s19 }
   0xb   : > { %s2221_s29 = scalar_lea.vmem %s161_s26, 2048  ;;  %p2229_p12 = scmp.lt.s32.totalorder %s161_s26, %s161_s26 }
   0xc   : > { %p2121_p6 = pneg %p2428_p5  ;;  %p2222_p9 = scmp.ne.s32.totalorder %s161_s26, %s2221_s29 }
   0xd   : > { %p2230_p13 = scmp.lt.s32.totalorder %s2221_s29, %s2221_s29 }
   0xe   : > { %p2436_p7 = pnand %p2121_p6, %p2416_p1 }
   0xf   : > { %p2231_p0 = por %p2230_p13, %p2229_p12 }
  0x10   : > { %p2212_p8 = pneg %p2436_p7 }
  0x12   : > { %p2224_p10 = pnand %p2222_p9, %p2212_p8 }
  0x14   : > { %p2225_p11 = pneg %p2224_p10 }
  0x16   : > { %p2232_p2 = pnand %p2231_p0, %p2225_p11 }
  0x18   : > { %2235 = shalt.err (!%p2232_p2)
}
  0x19   : > { %s2349_s30 = smov 256   ;;  %s2350_s5 = smov 16  }
  0x1a   : > { %2124 = dma.hbm_to_vmem [thread:$0]  (!%p2436_p7), %s3540_s1, 2048, %s161_s26, [#allocation8], %s2349_s30, %s2349_s30, %s2350_s5  }
  0x1b   : > { %p33_p3 = scmp.ge.s32.totalorder %s31_s28, 2  ;;  %s40_s8 = sadd.s32 1, %s2334_s17 }
  0x1c   : > { %p47_p6 = scmp.ne.s32.totalorder %s2334_s17, %s2330_s16  ;;  %p48_p8 = scmp.eq.s32.totalorder %s2346_s20, 0 }
  0x1d   : > { %s3650_s28 = smov (%p33_p3, %s31_s28), 0  ;;  %p2130_p10 = scmp.lt.s32.totalorder %s2346_s20, 2 }
  0x1e   : > { %p49_p9 = por %p48_p8, %p47_p6  ;;  %s35_s9 = ssub.s32 %s2342_s19, %s3650_s28 }
  0x1f   : > { %s180_s10 = sand.u32 1, %s2334_s17   ;;  %p38_p11 = scmp.eq.s32.totalorder %s35_s9, 0 }
  0x20   : > { %s2108_s11 = smul.u32 1536, %s180_s10  ;;  %p2458_p12 = pnand %p2130_p10, %p49_p9 }
  0x21   : > { %s2463_s13 = scalar_select %p38_p11, %s2334_s17, %s40_s8  }
  0x22   : > { %s2109_s14 = smul.u32 24576, %s2342_s19  ;;  %s184_s15 = scalar_lea.vmem [#allocation4], %s2108_s11 }
  0x23   : > { %s193_s25 = sshll.u32 %s184_s15, 4  ;;  %s181_s30 = scalar_lea.sflag [#allocation5], %s180_s10  ;;  %s194_s25 = int_to_ptr.vmem [resolvable:$true] %s193_s25 }
  0x24   : > { %s192_s29 = scalar_lea.hbm %s3539_s0, %s2109_s14  ;;  %p2238_p7 = pneg %p2458_p12 }
  0x25   : > { %s2249_s5 = scalar_lea.vmem %s194_s25, 24576  ;;  %s2351_s6 = smov [#allocation4]  }
  0x26   : > { %p2250_p13 = scmp.ne.s32.totalorder %s194_s25, %s2249_s5  ;;  %s2254_s7 = sshll.u32 %s2351_s6, 4  ;;  %s2255_s7 = int_to_ptr.vmem [resolvable:$false] %s2254_s7 }
  0x27   : > { %s2256_s8 = scalar_lea.vmem %s2255_s7, 49152  ;;  %p2257_p3 = scmp.lt.s32.totalorder %s194_s25, %s2255_s7 }
  0x28   : > { %p2252_p0 = pnand %p2250_p13, %p2238_p7  ;;  %p2258_p6 = scmp.lt.s32.totalorder %s2256_s8, %s2249_s5 }
  0x2a   : > { %p2253_p2 = pneg %p2252_p0  ;;  %p2259_p8 = por %p2258_p6, %p2257_p3 }
  0x2c   : > { %p2260_p9 = pnand %p2259_p8, %p2253_p2 }
  0x2e   : > { %2263 = shalt.err (!%p2260_p9)
}
  0x2f   : > { %s2352_s9 = smov 1024   ;;  %s2353_s11 = smov 64  }
  0x30   : > { %2128 = dma.hbm_to_vmem [thread:$0]  (!%p2458_p12), %s192_s29, 24576, %s194_s25, %s181_s30, %s2352_s9, %s2352_s9, %s2353_s11  }
  0x31   : > { %205 = sbr.rel (%p2428_p5) target bundleno = 816 (0x330), region = 36  ;;  %s207_s10 = sand.u32 (!%p2428_p5), 1, %s2330_s16  }
  0x32   : > { %s2110_s14 = smul.u32 (!%p2428_p5), 1536, %s207_s10  ;;  %s208_s15 = scalar_lea.sflag (!%p2428_p5), [#allocation5], %s207_s10 }
  0x34   : > { %s2476_s26 = scalar_lea.vmem (!%p2428_p5), [#allocation4], %s2110_s14 }
  0x36   : > { %2313 = dma.done.wait (%p2424_p4), %s208_s15, 24576  }
  0x37   : > { %2315 = vsyncadd (%p2424_p4), %s208_s15, 4294942720 }
  0x38   : > { %2317 = dma.done.wait (%p2416_p1), [#allocation8], 2048  }
  0x39   : > { %2319 = vsyncadd (%p2416_p1), [#allocation8], 4294965248  ;;  %p236_p5 = scmp.eq.s32.totalorder %s2338_s18, 0 }
  0x3a   : > { %vm242_vm0 = vcmask (%p236_p5), 7168   ;;  %v2354_v0 = vmov (%p236_p5), 0.0  }
  0x3b   : > { %241 = sbr.rel (!%p236_p5) target bundleno = 67 (0x43), region = 48  ;;  %243 = vst.msk [vmem:[#allocation2] sm:$0xff] (%p236_p5), %vm242_vm0, %v2354_v0  ;;  %244 = vst.msk [vmem:[#allocation2 + $0x8] sm:$0xff] (%p236_p5), %vm242_vm0, %v2354_v0 }
  0x3c   : > { %245 = vst.msk [vmem:[#allocation2 + $0x10] sm:$0xff] (%p236_p5), %vm242_vm0, %v2354_v0  ;;  %246 = vst.msk [vmem:[#allocation2 + $0x18] sm:$0xff] (%p236_p5), %vm242_vm0, %v2354_v0 }
  0x3d   : > { %247 = vst.msk [vmem:[#allocation2 + $0x20] sm:$0xff] (%p236_p5), %vm242_vm0, %v2354_v0  ;;  %248 = vst.msk [vmem:[#allocation2 + $0x28] sm:$0xff] (%p236_p5), %vm242_vm0, %v2354_v0 }
  0x3e   : > { %249 = vst.msk [vmem:[#allocation2 + $0x30] sm:$0xff] (%p236_p5), %vm242_vm0, %v2354_v0  ;;  %250 = vst.msk [vmem:[#allocation2 + $0x38] sm:$0xff] (%p236_p5), %vm242_vm0, %v2354_v0 }
  0x3f   : > { %251 = vst.msk [vmem:[#allocation3] sm:$0xff] (%p236_p5), %vm242_vm0, %v2354_v0  ;;  %252 = vst.msk [vmem:[#allocation3 + $0x8] sm:$0xff] (%p236_p5), %vm242_vm0, %v2354_v0 }
  0x40   : > { %253 = vst.msk [vmem:[#allocation3 + $0x10] sm:$0xff] %vm242_vm0, %v2354_v0  ;;  %254 = vst.msk [vmem:[#allocation3 + $0x18] sm:$0xff] %vm242_vm0, %v2354_v0 }
  0x41   : > { %255 = vst.msk [vmem:[#allocation3 + $0x20] sm:$0xff] %vm242_vm0, %v2354_v0  ;;  %256 = vst.msk [vmem:[#allocation3 + $0x28] sm:$0xff] %vm242_vm0, %v2354_v0 }
  0x42   : > { %257 = vst.msk [vmem:[#allocation3 + $0x30] sm:$0xff] %vm242_vm0, %v2354_v0  ;;  %258 = vst.msk [vmem:[#allocation3 + $0x38] sm:$0xff] %vm242_vm0, %v2354_v0 }
  0x43 PF: > { %v396_v1 = vld [vmem:[%s2476_s26 + $0x3c8] sm:$0xff]  ;;  %v395_v2 = vld [vmem:[%s2476_s26 + $0x3c0] sm:$0xff]  ;;  %v398_v4 = vld [vmem:[%s2476_s26 + $0x3d8] sm:$0xff]  ;;  %vm467_vm1 = vcmask 523264   ;;  %s2106_s22 = sshll.u32 %s2338_s18, 9  ;;  %p1272_p1 = scmp.eq.s32.totalorder %s2338_s18, 1 }
  0x44   : > { %v388_v3 = vld [vmem:[%s2476_s26 + $0x388] sm:$0xff]  ;;  %492 = vmatprep.subr.mxu0 %v396_v1  ;;  %v387_v5 = vld [vmem:[%s2476_s26 + $0x380] sm:$0xff]  ;;  %v397_v6 = vld [vmem:[%s2476_s26 + $0x3d0] sm:$0xff]  ;;  %605 = vmatprep.subr.mxu1 %v398_v4  ;;  %s2824_s23 = scalar_lea.vmem [#allocation9], %s2106_s22  ;;  %vm1032_vm2 = vcmask 7168  }
  0x45   : > { %493 = vmatpush1.msra.mxu0 %v395_v2  ;;  %v380_v7 = vld [vmem:[%s2476_s26 + $0x348] sm:$0xff]  ;;  %v390_v8 = vld [vmem:[%s2476_s26 + $0x398] sm:$0xff]  ;;  %606 = vmatpush1.msra.mxu1 %v397_v6  ;;  %v379_v9 = vld [vmem:[%s2476_s26 + $0x340] sm:$0xff] }
  0x46   : > { %494 = vmatprep.subr.mxu0 %v388_v3  ;;  %v389_v10 = vld [vmem:[%s2476_s26 + $0x390] sm:$0xff]  ;;  %v382_v11 = vld [vmem:[%s2476_s26 + $0x358] sm:$0xff]  ;;  %607 = vmatprep.subr.mxu1 %v390_v8  ;;  %v372_v12 = vld [vmem:[%s2476_s26 + $0x308] sm:$0xff] }
  0x47   : > { %495 = vmatpush1.msra.mxu0 %v387_v5  ;;  %v381_v13 = vld [vmem:[%s2476_s26 + $0x350] sm:$0xff]  ;;  %608 = vmatpush1.msra.mxu1 %v389_v10  ;;  %v371_v14 = vld [vmem:[%s2476_s26 + $0x300] sm:$0xff]  ;;  %v374_v15 = vld [vmem:[%s2476_s26 + $0x318] sm:$0xff] }
  0x48   : > { %496 = vmatprep.subr.mxu0 %v380_v7  ;;  %609 = vmatprep.subr.mxu1 %v382_v11  ;;  %v364_v16 = vld [vmem:[%s2476_s26 + $0x2c8] sm:$0xff]  ;;  %v373_v17 = vld [vmem:[%s2476_s26 + $0x310] sm:$0xff]  ;;  %v363_v18 = vld [vmem:[%s2476_s26 + $0x2c0] sm:$0xff] }
  0x49   : > { %497 = vmatpush1.msra.mxu0 %v379_v9  ;;  %610 = vmatpush1.msra.mxu1 %v381_v13  ;;  %v366_v19 = vld [vmem:[%s2476_s26 + $0x2d8] sm:$0xff]  ;;  %v356_v20 = vld [vmem:[%s2476_s26 + $0x288] sm:$0xff]  ;;  %v365_v21 = vld [vmem:[%s2476_s26 + $0x2d0] sm:$0xff] }
  0x4a   : > { %498 = vmatprep.subr.mxu0 %v372_v12  ;;  %611 = vmatprep.subr.mxu1 %v374_v15  ;;  %v355_v22 = vld [vmem:[%s2476_s26 + $0x280] sm:$0xff]  ;;  %v358_v23 = vld [vmem:[%s2476_s26 + $0x298] sm:$0xff]  ;;  %v348_v24 = vld [vmem:[%s2476_s26 + $0x248] sm:$0xff] }
  0x4b   : > { %499 = vmatpush1.msra.mxu0 %v371_v14  ;;  %612 = vmatpush1.msra.mxu1 %v373_v17  ;;  %v357_v25 = vld [vmem:[%s2476_s26 + $0x290] sm:$0xff]  ;;  %v347_v26 = vld [vmem:[%s2476_s26 + $0x240] sm:$0xff]  ;;  %v350_v27 = vld [vmem:[%s2476_s26 + $0x258] sm:$0xff] }
  0x4c   : > { %500 = vmatprep.subr.mxu0 %v364_v16  ;;  %613 = vmatprep.subr.mxu1 %v366_v19  ;;  %v340_v28 = vld [vmem:[%s2476_s26 + $0x208] sm:$0xff]  ;;  %v349_v29 = vld [vmem:[%s2476_s26 + $0x250] sm:$0xff]  ;;  %v339_v30 = vld [vmem:[%s2476_s26 + $0x200] sm:$0xff] }
  0x4d   : > { %501 = vmatpush1.msra.mxu0 %v363_v18  ;;  %614 = vmatpush1.msra.mxu1 %v365_v21  ;;  %v342_v31 = vld [vmem:[%s2476_s26 + $0x218] sm:$0xff]  ;;  %v332_v32 = vld [vmem:[%s2476_s26 + $0x1c8] sm:$0xff]  ;;  %v341_v33 = vld [vmem:[%s2476_s26 + $0x210] sm:$0xff] }
  0x4e   : > { %502 = vmatprep.subr.mxu0 %v356_v20  ;;  %615 = vmatprep.subr.mxu1 %v358_v23  ;;  %v331_v34 = vld [vmem:[%s2476_s26 + $0x1c0] sm:$0xff]  ;;  %v334_v35 = vld [vmem:[%s2476_s26 + $0x1d8] sm:$0xff]  ;;  %v324_v36 = vld [vmem:[%s2476_s26 + $0x188] sm:$0xff] }
  0x4f   : > { %503 = vmatpush1.msra.mxu0 %v355_v22  ;;  %616 = vmatpush1.msra.mxu1 %v357_v25  ;;  %v333_v37 = vld [vmem:[%s2476_s26 + $0x1d0] sm:$0xff]  ;;  %v323_v38 = vld [vmem:[%s2476_s26 + $0x180] sm:$0xff]  ;;  %v326_v39 = vld [vmem:[%s2476_s26 + $0x198] sm:$0xff] }
  0x50   : > { %504 = vmatprep.subr.mxu0 %v348_v24  ;;  %617 = vmatprep.subr.mxu1 %v350_v27  ;;  %v316_v40 = vld [vmem:[%s2476_s26 + $0x148] sm:$0xff]  ;;  %v325_v41 = vld [vmem:[%s2476_s26 + $0x190] sm:$0xff]  ;;  %v315_v42 = vld [vmem:[%s2476_s26 + $0x140] sm:$0xff] }
  0x51   : > { %505 = vmatpush1.msra.mxu0 %v347_v26  ;;  %618 = vmatpush1.msra.mxu1 %v349_v29  ;;  %v318_v43 = vld [vmem:[%s2476_s26 + $0x158] sm:$0xff]  ;;  %v308_v44 = vld [vmem:[%s2476_s26 + $0x108] sm:$0xff]  ;;  %v317_v45 = vld [vmem:[%s2476_s26 + $0x150] sm:$0xff] }
  0x52   : > { %506 = vmatprep.subr.mxu0 %v340_v28  ;;  %619 = vmatprep.subr.mxu1 %v342_v31  ;;  %v307_v46 = vld [vmem:[%s2476_s26 + $0x100] sm:$0xff]  ;;  %v310_v47 = vld [vmem:[%s2476_s26 + $0x118] sm:$0xff]  ;;  %v300_v48 = vld [vmem:[%s2476_s26 + $0xc8] sm:$0xff] }
  0x53   : > { %507 = vmatpush1.msra.mxu0 %v339_v30  ;;  %620 = vmatpush1.msra.mxu1 %v341_v33  ;;  %v309_v49 = vld [vmem:[%s2476_s26 + $0x110] sm:$0xff]  ;;  %v299_v50 = vld [vmem:[%s2476_s26 + $0xc0] sm:$0xff]  ;;  %v302_v51 = vld [vmem:[%s2476_s26 + $0xd8] sm:$0xff] }
  0x54   : > { %508 = vmatprep.subr.mxu0 %v332_v32  ;;  %621 = vmatprep.subr.mxu1 %v334_v35  ;;  %v292_v52 = vld [vmem:[%s2476_s26 + $0x88] sm:$0xff]  ;;  %v301_v53 = vld [vmem:[%s2476_s26 + $0xd0] sm:$0xff]  ;;  %v291_v54 = vld [vmem:[%s2476_s26 + $0x80] sm:$0xff] }
  0x55   : > { %509 = vmatpush1.msra.mxu0 %v331_v34  ;;  %622 = vmatpush1.msra.mxu1 %v333_v37  ;;  %v294_v55 = vld [vmem:[%s2476_s26 + $0x98] sm:$0xff]  ;;  %v284_v56 = vld [vmem:[%s2476_s26 + $0x48] sm:$0xff]  ;;  %v293_v57 = vld [vmem:[%s2476_s26 + $0x90] sm:$0xff] }
  0x56   : > { %510 = vmatprep.subr.mxu0 %v324_v36  ;;  %623 = vmatprep.subr.mxu1 %v326_v39  ;;  %v283_v58 = vld [vmem:[%s2476_s26 + $0x40] sm:$0xff]  ;;  %v286_v59 = vld [vmem:[%s2476_s26 + $0x58] sm:$0xff]  ;;  %v276_v60 = vld [vmem:[%s2476_s26 + $0x8] sm:$0xff] }
  0x57   : > { %511 = vmatpush1.msra.mxu0 %v323_v38  ;;  %624 = vmatpush1.msra.mxu1 %v325_v41  ;;  %v285_v61 = vld [vmem:[%s2476_s26 + $0x50] sm:$0xff]  ;;  %v275_v62 = vld [vmem:[%s2476_s26] sm:$0xff]  ;;  %v278_v63 = vld [vmem:[%s2476_s26 + $0x18] sm:$0xff] }
  0x58   : > { %512 = vmatprep.subr.mxu0 %v316_v40  ;;  %625 = vmatprep.subr.mxu1 %v318_v43  ;;  %v460_v0 = vld [vmem:[%s2476_s26 + $0x5c8] sm:$0xff]  ;;  %v277_v1 = vld [vmem:[%s2476_s26 + $0x10] sm:$0xff]  ;;  %v459_v2 = vld [vmem:[%s2476_s26 + $0x5c0] sm:$0xff] }
  0x59   : > { %513 = vmatpush1.msra.mxu0 %v315_v42  ;;  %626 = vmatpush1.msra.mxu1 %v317_v45  ;;  %v462_v3 = vld [vmem:[%s2476_s26 + $0x5d8] sm:$0xff]  ;;  %v452_v4 = vld [vmem:[%s2476_s26 + $0x588] sm:$0xff]  ;;  %v461_v5 = vld [vmem:[%s2476_s26 + $0x5d0] sm:$0xff] }
  0x5a   : > { %514 = vmatprep.subr.mxu0 %v308_v44  ;;  %627 = vmatprep.subr.mxu1 %v310_v47  ;;  %v451_v6 = vld [vmem:[%s2476_s26 + $0x580] sm:$0xff]  ;;  %v454_v7 = vld [vmem:[%s2476_s26 + $0x598] sm:$0xff]  ;;  %v444_v8 = vld [vmem:[%s2476_s26 + $0x548] sm:$0xff] }
  0x5b   : > { %515 = vmatpush1.msra.mxu0 %v307_v46  ;;  %628 = vmatpush1.msra.mxu1 %v309_v49  ;;  %v453_v9 = vld [vmem:[%s2476_s26 + $0x590] sm:$0xff]  ;;  %v443_v10 = vld [vmem:[%s2476_s26 + $0x540] sm:$0xff]  ;;  %v446_v11 = vld [vmem:[%s2476_s26 + $0x558] sm:$0xff] }
  0x5c   : > { %516 = vmatprep.subr.mxu0 %v300_v48  ;;  %629 = vmatprep.subr.mxu1 %v302_v51  ;;  %v436_v12 = vld [vmem:[%s2476_s26 + $0x508] sm:$0xff]  ;;  %v445_v13 = vld [vmem:[%s2476_s26 + $0x550] sm:$0xff]  ;;  %v435_v14 = vld [vmem:[%s2476_s26 + $0x500] sm:$0xff] }
  0x5d   : > { %517 = vmatpush1.msra.mxu0 %v299_v50  ;;  %630 = vmatpush1.msra.mxu1 %v301_v53  ;;  %v438_v15 = vld [vmem:[%s2476_s26 + $0x518] sm:$0xff]  ;;  %v428_v16 = vld [vmem:[%s2476_s26 + $0x4c8] sm:$0xff]  ;;  %v437_v17 = vld [vmem:[%s2476_s26 + $0x510] sm:$0xff] }
  0x5e   : > { %518 = vmatprep.subr.mxu0 %v292_v52  ;;  %631 = vmatprep.subr.mxu1 %v294_v55  ;;  %v427_v18 = vld [vmem:[%s2476_s26 + $0x4c0] sm:$0xff]  ;;  %v430_v19 = vld [vmem:[%s2476_s26 + $0x4d8] sm:$0xff]  ;;  %v420_v20 = vld [vmem:[%s2476_s26 + $0x488] sm:$0xff] }
  0x5f   : > { %519 = vmatpush1.msra.mxu0 %v291_v54  ;;  %632 = vmatpush1.msra.mxu1 %v293_v57  ;;  %v429_v21 = vld [vmem:[%s2476_s26 + $0x4d0] sm:$0xff]  ;;  %v419_v22 = vld [vmem:[%s2476_s26 + $0x480] sm:$0xff]  ;;  %v422_v23 = vld [vmem:[%s2476_s26 + $0x498] sm:$0xff] }
  0x60   : > { %520 = vmatprep.subr.mxu0 %v284_v56  ;;  %633 = vmatprep.subr.mxu1 %v286_v59  ;;  %v412_v24 = vld [vmem:[%s2476_s26 + $0x448] sm:$0xff]  ;;  %v421_v25 = vld [vmem:[%s2476_s26 + $0x490] sm:$0xff]  ;;  %v411_v26 = vld [vmem:[%s2476_s26 + $0x440] sm:$0xff] }
  0x61   : > { %521 = vmatpush1.msra.mxu0 %v283_v58  ;;  %634 = vmatpush1.msra.mxu1 %v285_v61  ;;  %v414_v27 = vld [vmem:[%s2476_s26 + $0x458] sm:$0xff]  ;;  %v404_v28 = vld [vmem:[%s2476_s26 + $0x408] sm:$0xff]  ;;  %v403_v30 = vld [vmem:[%s2476_s26 + $0x400] sm:$0xff] }
  0x62   : > { %522 = vmatprep.subr.mxu0 %v276_v60  ;;  %635 = vmatprep.subr.mxu1 %v278_v63  ;;  %v2595_v29 = vld [vmem:[#allocation7 + $0x8] sm:$0xff]  ;;  %v413_v31 = vld [vmem:[%s2476_s26 + $0x450] sm:$0xff]  ;;  %v2599_v32 = vld [vmem:[#allocation7] sm:$0xff] }
  0x63   : > { %523 = vmatpush1.msra.mxu0 %v275_v62  ;;  %636 = vmatpush1.msra.mxu1 %v277_v1  ;;  %v406_v33 = vld [vmem:[%s2476_s26 + $0x418] sm:$0xff]  ;;  %v400_v34 = vld [vmem:[%s2476_s26 + $0x3e8] sm:$0xff]  ;;  %v405_v35 = vld [vmem:[%s2476_s26 + $0x410] sm:$0xff] }
  0x64   : > { %540 = vmatprep.subr.mxu0 %v460_v0  ;;  %653 = vmatprep.subr.mxu1 %v462_v3  ;;  %v399_v36 = vld [vmem:[%s2476_s26 + $0x3e0] sm:$0xff]  ;;  %v392_v37 = vld [vmem:[%s2476_s26 + $0x3a8] sm:$0xff]  ;;  %v402_v38 = vld [vmem:[%s2476_s26 + $0x3f8] sm:$0xff] }
  0x65   : > { %541 = vmatpush2.msra.mxu0 %v459_v2  ;;  %654 = vmatpush2.msra.mxu1 %v461_v5  ;;  %v391_v39 = vld [vmem:[%s2476_s26 + $0x3a0] sm:$0xff]  ;;  %v401_v40 = vld [vmem:[%s2476_s26 + $0x3f0] sm:$0xff]  ;;  %v384_v41 = vld [vmem:[%s2476_s26 + $0x368] sm:$0xff] }
  0x66   : > { %542 = vmatprep.subr.mxu0 %v452_v4  ;;  %655 = vmatprep.subr.mxu1 %v454_v7  ;;  %v394_v42 = vld [vmem:[%s2476_s26 + $0x3b8] sm:$0xff]  ;;  %v383_v43 = vld [vmem:[%s2476_s26 + $0x360] sm:$0xff]  ;;  %v393_v44 = vld [vmem:[%s2476_s26 + $0x3b0] sm:$0xff] }
  0x67   : > { %543 = vmatpush2.msra.mxu0 %v451_v6  ;;  %656 = vmatpush2.msra.mxu1 %v453_v9  ;;  %v376_v45 = vld [vmem:[%s2476_s26 + $0x328] sm:$0xff]  ;;  %v386_v46 = vld [vmem:[%s2476_s26 + $0x378] sm:$0xff]  ;;  %v375_v47 = vld [vmem:[%s2476_s26 + $0x320] sm:$0xff] }
  0x68   : > { %544 = vmatprep.subr.mxu0 %v444_v8  ;;  %657 = vmatprep.subr.mxu1 %v446_v11  ;;  %v385_v48 = vld [vmem:[%s2476_s26 + $0x370] sm:$0xff]  ;;  %v368_v49 = vld [vmem:[%s2476_s26 + $0x2e8] sm:$0xff]  ;;  %v378_v50 = vld [vmem:[%s2476_s26 + $0x338] sm:$0xff] }
  0x69   : > { %545 = vmatpush2.msra.mxu0 %v443_v10  ;;  %658 = vmatpush2.msra.mxu1 %v445_v13  ;;  %v367_v51 = vld [vmem:[%s2476_s26 + $0x2e0] sm:$0xff]  ;;  %v377_v52 = vld [vmem:[%s2476_s26 + $0x330] sm:$0xff]  ;;  %v360_v53 = vld [vmem:[%s2476_s26 + $0x2a8] sm:$0xff] }
  0x6a   : > { %546 = vmatprep.subr.mxu0 %v436_v12  ;;  %659 = vmatprep.subr.mxu1 %v438_v15  ;;  %v370_v54 = vld [vmem:[%s2476_s26 + $0x2f8] sm:$0xff]  ;;  %v359_v55 = vld [vmem:[%s2476_s26 + $0x2a0] sm:$0xff]  ;;  %v369_v56 = vld [vmem:[%s2476_s26 + $0x2f0] sm:$0xff] }
  0x6b   : > { %547 = vmatpush2.msra.mxu0 %v435_v14  ;;  %660 = vmatpush2.msra.mxu1 %v437_v17  ;;  %v352_v57 = vld [vmem:[%s2476_s26 + $0x268] sm:$0xff]  ;;  %v362_v58 = vld [vmem:[%s2476_s26 + $0x2b8] sm:$0xff]  ;;  %v351_v59 = vld [vmem:[%s2476_s26 + $0x260] sm:$0xff] }
  0x6c   : > { %548 = vmatprep.subr.mxu0 %v428_v16  ;;  %661 = vmatprep.subr.mxu1 %v430_v19  ;;  %v361_v60 = vld [vmem:[%s2476_s26 + $0x2b0] sm:$0xff]  ;;  %v344_v61 = vld [vmem:[%s2476_s26 + $0x228] sm:$0xff]  ;;  %v354_v62 = vld [vmem:[%s2476_s26 + $0x278] sm:$0xff] }
  0x6d   : > { %549 = vmatpush2.msra.mxu0 %v427_v18  ;;  %662 = vmatpush2.msra.mxu1 %v429_v21  ;;  %v343_v63 = vld [vmem:[%s2476_s26 + $0x220] sm:$0xff]  ;;  %v353_v0 = vld [vmem:[%s2476_s26 + $0x270] sm:$0xff]  ;;  %v336_v1 = vld [vmem:[%s2476_s26 + $0x1e8] sm:$0xff] }
  0x6e   : > { %550 = vmatprep.subr.mxu0 %v420_v20  ;;  %663 = vmatprep.subr.mxu1 %v422_v23  ;;  %v346_v2 = vld [vmem:[%s2476_s26 + $0x238] sm:$0xff]  ;;  %v335_v4 = vld [vmem:[%s2476_s26 + $0x1e0] sm:$0xff]  ;;  %v345_v5 = vld [vmem:[%s2476_s26 + $0x230] sm:$0xff] }
  0x6f   : > { %551 = vmatpush2.msra.mxu0 %v419_v22  ;;  %664 = vmatpush2.msra.mxu1 %v421_v25  ;;  %v2641_v3 = vld [vmem:[#allocation7 + $0x18] sm:$0xff]  ;;  %v2645_v6 = vld [vmem:[#allocation7 + $0x10] sm:$0xff]  ;;  %v328_v7 = vld [vmem:[%s2476_s26 + $0x1a8] sm:$0xff] }
  0x70   : > { %552 = vmatprep.subr.mxu0 %v412_v24  ;;  %665 = vmatprep.subr.mxu1 %v414_v27  ;;  %v338_v8 = vld [vmem:[%s2476_s26 + $0x1f8] sm:$0xff]  ;;  %v327_v9 = vld [vmem:[%s2476_s26 + $0x1a0] sm:$0xff]  ;;  %v337_v10 = vld [vmem:[%s2476_s26 + $0x1f0] sm:$0xff] }
  0x71   : > { %553 = vmatpush2.msra.mxu0 %v411_v26  ;;  %2066 = vmatprep.mubr.msk.f32.mxu0 %vm467_vm1, %v2595_v29  ;;  %v320_v11 = vld [vmem:[%s2476_s26 + $0x168] sm:$0xff]  ;;  %v330_v12 = vld [vmem:[%s2476_s26 + $0x1b8] sm:$0xff]  ;;  %v319_v14 = vld [vmem:[%s2476_s26 + $0x160] sm:$0xff] }
  0x72   : > { %554 = vmatprep.subr.mxu0 %v404_v28  ;;  %666 = vmatpush2.msra.mxu1 %v413_v31  ;;  %v2656_v13 = vld [vmem:[#allocation7 + $0x28] sm:$0xff]  ;;  %v329_v15 = vld [vmem:[%s2476_s26 + $0x1b0] sm:$0xff]  ;;  %v2660_v16 = vld [vmem:[#allocation7 + $0x20] sm:$0xff] }
  0x73   : > { %555 = vmatpush2.msra.mxu0 %v403_v30  ;;  %667 = vmatprep.subr.mxu1 %v406_v33  ;;  %v312_v17 = vld [vmem:[%s2476_s26 + $0x128] sm:$0xff]  ;;  %v322_v18 = vld [vmem:[%s2476_s26 + $0x178] sm:$0xff]  ;;  %v311_v19 = vld [vmem:[%s2476_s26 + $0x120] sm:$0xff] }
  0x74   : > { %557 = vmatmul.mubr.f32.vlgmr.msra.gmra.mxu0 %v2599_v32  ;;  %718 = vmatprep.subr.mxu0 %v400_v34  ;;  %v321_v20 = vld [vmem:[%s2476_s26 + $0x170] sm:$0xff]  ;;  %v304_v21 = vld [vmem:[%s2476_s26 + $0xe8] sm:$0xff]  ;;  %v314_v22 = vld [vmem:[%s2476_s26 + $0x138] sm:$0xff] }
  0x75   : > { %668 = vmatpush2.msra.mxu1 %v405_v35  ;;  %719 = vmatpush1.msra.mxu0 %v399_v36  ;;  %v2674_v23 = vld [vmem:[#allocation7 + $0x38] sm:$0xff]  ;;  %v303_v24 = vld [vmem:[%s2476_s26 + $0xe0] sm:$0xff]  ;;  %v313_v25 = vld [vmem:[%s2476_s26 + $0x130] sm:$0xff] }
  0x76   : > { %2074 = vmatprep.mubr.msk.f32.mxu1 %vm467_vm1, %v2595_v29  ;;  %720 = vmatprep.subr.mxu0 %v392_v37  ;;  %v2678_v26 = vld [vmem:[#allocation7 + $0x30] sm:$0xff]  ;;  %v296_v27 = vld [vmem:[%s2476_s26 + $0xa8] sm:$0xff]  ;;  %v306_v28 = vld [vmem:[%s2476_s26 + $0xf8] sm:$0xff] }
  0x77   : > { %831 = vmatprep.subr.mxu1 %v402_v38  ;;  %670 = vmatmul.mubr.f32.vlgmr.msra.gmra.mxu1 %v2599_v32  ;;  %v295_v30 = vld [vmem:[%s2476_s26 + $0xa0] sm:$0xff]  ;;  %v305_v31 = vld [vmem:[%s2476_s26 + $0xf0] sm:$0xff]  ;;  %v288_v33 = vld [vmem:[%s2476_s26 + $0x68] sm:$0xff] }
  0x78   : > { %721 = vmatpush1.msra.mxu0 %v391_v39  ;;  %832 = vmatpush1.msra.mxu1 %v401_v40  ;;  %v298_v34 = vld [vmem:[%s2476_s26 + $0xb8] sm:$0xff]  ;;  %v2692_v35 = vld [vmem:[#allocation7 + $0x48] sm:$0xff]  ;;  %v287_v36 = vld [vmem:[%s2476_s26 + $0x60] sm:$0xff] }
  0x79   : > { %722 = vmatprep.subr.mxu0 %v384_v41  ;;  %833 = vmatprep.subr.mxu1 %v394_v42  ;;  %v297_v37 = vld [vmem:[%s2476_s26 + $0xb0] sm:$0xff]  ;;  %v2696_v38 = vld [vmem:[#allocation7 + $0x40] sm:$0xff]  ;;  %v280_v39 = vld [vmem:[%s2476_s26 + $0x28] sm:$0xff] }
  0x7a   : > { %723 = vmatpush1.msra.mxu0 %v383_v43  ;;  %834 = vmatpush1.msra.mxu1 %v393_v44  ;;  %v290_v40 = vld [vmem:[%s2476_s26 + $0x78] sm:$0xff]  ;;  %v279_v41 = vld [vmem:[%s2476_s26 + $0x20] sm:$0xff]  ;;  %v289_v42 = vld [vmem:[%s2476_s26 + $0x70] sm:$0xff] }
  0x7b   : > { %724 = vmatprep.subr.mxu0 %v376_v45  ;;  %835 = vmatprep.subr.mxu1 %v386_v46  ;;  %v464_v43 = vld [vmem:[%s2476_s26 + $0x5e8] sm:$0xff]  ;;  %v282_v44 = vld [vmem:[%s2476_s26 + $0x38] sm:$0xff]  ;;  %v463_v46 = vld [vmem:[%s2476_s26 + $0x5e0] sm:$0xff] }
  0x7c   : > { %725 = vmatpush1.msra.mxu0 %v375_v47  ;;  %836 = vmatpush1.msra.mxu1 %v385_v48  ;;  %v2710_v45 = vld [vmem:[#allocation7 + $0x58] sm:$0xff]  ;;  %v281_v47 = vld [vmem:[%s2476_s26 + $0x30] sm:$0xff] }
  0x7d   : > { %726 = vmatprep.subr.mxu0 %v368_v49  ;;  %837 = vmatprep.subr.mxu1 %v378_v50  ;;  %v2714_v48 = vld [vmem:[#allocation7 + $0x50] sm:$0xff]  ;;  %v456_v49 = vld [vmem:[%s2476_s26 + $0x5a8] sm:$0xff]  ;;  %v466_v50 = vld [vmem:[%s2476_s26 + $0x5f8] sm:$0xff] }
  0x7e   : > { %727 = vmatpush1.msra.mxu0 %v367_v51  ;;  %838 = vmatpush1.msra.mxu1 %v377_v52  ;;  %v455_v51 = vld [vmem:[%s2476_s26 + $0x5a0] sm:$0xff]  ;;  %v465_v52 = vld [vmem:[%s2476_s26 + $0x5f0] sm:$0xff] }
  0x7f   : > { %728 = vmatprep.subr.mxu0 %v360_v53  ;;  %839 = vmatprep.subr.mxu1 %v370_v54  ;;  %v448_v53 = vld [vmem:[%s2476_s26 + $0x568] sm:$0xff]  ;;  %v458_v54 = vld [vmem:[%s2476_s26 + $0x5b8] sm:$0xff] }
  0x80   : > { %729 = vmatpush1.msra.mxu0 %v359_v55  ;;  %840 = vmatpush1.msra.mxu1 %v369_v56  ;;  %v2728_v55 = vld [vmem:[#allocation7 + $0x68] sm:$0xff]  ;;  %v447_v56 = vld [vmem:[%s2476_s26 + $0x560] sm:$0xff] }
  0x81   : > { %730 = vmatprep.subr.mxu0 %v352_v57  ;;  %841 = vmatprep.subr.mxu1 %v362_v58  ;;  %v457_v57 = vld [vmem:[%s2476_s26 + $0x5b0] sm:$0xff]  ;;  %v2732_v58 = vld [vmem:[#allocation7 + $0x60] sm:$0xff] }
  0x82   : > { %731 = vmatpush1.msra.mxu0 %v351_v59  ;;  %842 = vmatpush1.msra.mxu1 %v361_v60  ;;  %v440_v59 = vld [vmem:[%s2476_s26 + $0x528] sm:$0xff]  ;;  %v450_v60 = vld [vmem:[%s2476_s26 + $0x578] sm:$0xff] }
  0x83   : > { %732 = vmatprep.subr.mxu0 %v344_v61  ;;  %843 = vmatprep.subr.mxu1 %v354_v62  ;;  %v439_v61 = vld [vmem:[%s2476_s26 + $0x520] sm:$0xff]  ;;  %v449_v62 = vld [vmem:[%s2476_s26 + $0x570] sm:$0xff] }
  0x84   : > { %733 = vmatpush1.msra.mxu0 %v343_v63  ;;  %844 = vmatpush1.msra.mxu1 %v353_v0  ;;  %v432_v63 = vld [vmem:[%s2476_s26 + $0x4e8] sm:$0xff]  ;;  %v442_v0 = vld [vmem:[%s2476_s26 + $0x538] sm:$0xff] }
  0x85   : > { %734 = vmatprep.subr.mxu0 %v336_v1  ;;  %845 = vmatprep.subr.mxu1 %v346_v2  ;;  %v2746_v1 = vld [vmem:[#allocation7 + $0x78] sm:$0xff]  ;;  %v431_v2 = vld [vmem:[%s2476_s26 + $0x4e0] sm:$0xff] }
  0x86   : > { %2067 = vmatprep.mubr.msk.f32.mxu0 %vm467_vm1, %v2641_v3  ;;  %735 = vmatpush1.msra.mxu0 %v335_v4  ;;  %v441_v4 = vld [vmem:[%s2476_s26 + $0x530] sm:$0xff] }
  0x87   : > { %846 = vmatpush1.msra.mxu1 %v345_v5  ;;  %563 = vmatmul.mubr.f32.gmra.mxu0 %v2645_v6  ;;  %v2750_v5 = vld [vmem:[#allocation7 + $0x70] sm:$0xff] }
  0x88   : > { %736 = vmatprep.subr.mxu0 %v328_v7  ;;  %847 = vmatprep.subr.mxu1 %v338_v8  ;;  %v424_v7 = vld [vmem:[%s2476_s26 + $0x4a8] sm:$0xff]  ;;  %v434_v8 = vld [vmem:[%s2476_s26 + $0x4f8] sm:$0xff] }
  0x89   : > { %737 = vmatpush1.msra.mxu0 %v327_v9  ;;  %848 = vmatpush1.msra.mxu1 %v337_v10  ;;  %v423_v9 = vld [vmem:[%s2476_s26 + $0x4a0] sm:$0xff]  ;;  %v433_v10 = vld [vmem:[%s2476_s26 + $0x4f0] sm:$0xff] }
  0x8a   : > { %738 = vmatprep.subr.mxu0 %v320_v11  ;;  %849 = vmatprep.subr.mxu1 %v330_v12  ;;  %v416_v11 = vld [vmem:[%s2476_s26 + $0x468] sm:$0xff]  ;;  %v426_v12 = vld [vmem:[%s2476_s26 + $0x4b8] sm:$0xff] }
  0x8b   : > { %2068 = vmatprep.mubr.msk.f32.mxu0 %vm467_vm1, %v2656_v13  ;;  %2075 = vmatprep.mubr.msk.f32.mxu1 %vm467_vm1, %v2641_v3 }
  0x8c   : > { %739 = vmatpush1.msra.mxu0 %v319_v14  ;;  %850 = vmatpush1.msra.mxu1 %v329_v15  ;;  %v415_v14 = vld [vmem:[%s2476_s26 + $0x460] sm:$0xff]  ;;  %v425_v15 = vld [vmem:[%s2476_s26 + $0x4b0] sm:$0xff] }
  0x8d   : > { %569 = vmatmul.mubr.f32.gmra.mxu0 %v2660_v16  ;;  %676 = vmatmul.mubr.f32.gmra.mxu1 %v2645_v6 }
  0x8e   : > { %740 = vmatprep.subr.mxu0 %v312_v17  ;;  %851 = vmatprep.subr.mxu1 %v322_v18  ;;  %v408_v17 = vld [vmem:[%s2476_s26 + $0x428] sm:$0xff]  ;;  %v418_v18 = vld [vmem:[%s2476_s26 + $0x478] sm:$0xff] }
  0x8f   : > { %741 = vmatpush1.msra.mxu0 %v311_v19  ;;  %852 = vmatpush1.msra.mxu1 %v321_v20  ;;  %v407_v19 = vld [vmem:[%s2476_s26 + $0x420] sm:$0xff]  ;;  %v417_v20 = vld [vmem:[%s2476_s26 + $0x470] sm:$0xff] }
  0x90   : > { %742 = vmatprep.subr.mxu0 %v304_v21  ;;  %853 = vmatprep.subr.mxu1 %v314_v22  ;;  %v410_v21 = vld [vmem:[%s2476_s26 + $0x438] sm:$0xff]  ;;  %v409_v22 = vld [vmem:[%s2476_s26 + $0x430] sm:$0xff] }
  0x91   : > { %2069 = vmatprep.mubr.msk.f32.mxu0 %vm467_vm1, %v2674_v23  ;;  %2076 = vmatprep.mubr.msk.f32.mxu1 %vm467_vm1, %v2656_v13 }
  0x92   : > { %743 = vmatpush1.msra.mxu0 %v303_v24  ;;  %854 = vmatpush1.msra.mxu1 %v313_v25 }
  0x93   : > { %575 = vmatmul.mubr.f32.gmra.mxu0 %v2678_v26  ;;  %682 = vmatmul.mubr.f32.gmra.mxu1 %v2660_v16 }
  0x94   : > { %744 = vmatprep.subr.mxu0 %v296_v27  ;;  %855 = vmatprep.subr.mxu1 %v306_v28 }
  0x95   : > { %745 = vmatpush1.msra.mxu0 %v295_v30  ;;  %856 = vmatpush1.msra.mxu1 %v305_v31 }
  0x96   : > { %746 = vmatprep.subr.mxu0 %v288_v33  ;;  %857 = vmatprep.subr.mxu1 %v298_v34 }
  0x97   : > { %2070 = vmatprep.mubr.msk.f32.mxu0 %vm467_vm1, %v2692_v35  ;;  %2077 = vmatprep.mubr.msk.f32.mxu1 %vm467_vm1, %v2674_v23 }
  0x98   : > { %747 = vmatpush1.msra.mxu0 %v287_v36  ;;  %858 = vmatpush1.msra.mxu1 %v297_v37 }
  0x99   : > { %581 = vmatmul.mubr.f32.gmra.mxu0 %v2696_v38  ;;  %688 = vmatmul.mubr.f32.gmra.mxu1 %v2678_v26 }
  0x9a   : > { %748 = vmatprep.subr.mxu0 %v280_v39  ;;  %859 = vmatprep.subr.mxu1 %v290_v40 }
  0x9b   : > { %749 = vmatpush1.msra.mxu0 %v279_v41  ;;  %860 = vmatpush1.msra.mxu1 %v289_v42 }
  0x9c   : > { %766 = vmatprep.subr.mxu0 %v464_v43  ;;  %861 = vmatprep.subr.mxu1 %v282_v44 }
  0x9d   : > { %2071 = vmatprep.mubr.msk.f32.mxu0 %vm467_vm1, %v2710_v45  ;;  %2078 = vmatprep.mubr.msk.f32.mxu1 %vm467_vm1, %v2692_v35 }
  0x9e   : > { %767 = vmatpush2.msra.mxu0 %v463_v46  ;;  %862 = vmatpush1.msra.mxu1 %v281_v47 }
  0x9f   : > { %587 = vmatmul.mubr.f32.gmra.mxu0 %v2714_v48  ;;  %694 = vmatmul.mubr.f32.gmra.mxu1 %v2696_v38 }
  0xa0   : > { %768 = vmatprep.subr.mxu0 %v456_v49  ;;  %879 = vmatprep.subr.mxu1 %v466_v50 }
  0xa1   : > { %769 = vmatpush2.msra.mxu0 %v455_v51  ;;  %880 = vmatpush2.msra.mxu1 %v465_v52 }
  0xa2   : > { %770 = vmatprep.subr.mxu0 %v448_v53  ;;  %881 = vmatprep.subr.mxu1 %v458_v54 }
  0xa3   : > { %2072 = vmatprep.mubr.msk.f32.mxu0 %vm467_vm1, %v2728_v55  ;;  %2079 = vmatprep.mubr.msk.f32.mxu1 %vm467_vm1, %v2710_v45 }
  0xa4   : > { %771 = vmatpush2.msra.mxu0 %v447_v56  ;;  %882 = vmatpush2.msra.mxu1 %v457_v57 }
  0xa5   : > { %593 = vmatmul.mubr.f32.gmra.mxu0 %v2732_v58  ;;  %700 = vmatmul.mubr.f32.gmra.mxu1 %v2714_v48 }
  0xa6   : > { %772 = vmatprep.subr.mxu0 %v440_v59  ;;  %883 = vmatprep.subr.mxu1 %v450_v60 }
  0xa7   : > { %773 = vmatpush2.msra.mxu0 %v439_v61  ;;  %884 = vmatpush2.msra.mxu1 %v449_v62 }
  0xa8   : > { %774 = vmatprep.subr.mxu0 %v432_v63  ;;  %885 = vmatprep.subr.mxu1 %v442_v0 }
  0xa9   : > { %2073 = vmatprep.mubr.msk.f32.mxu0 %vm467_vm1, %v2746_v1  ;;  %2080 = vmatprep.mubr.msk.f32.mxu1 %vm467_vm1, %v2728_v55 }
  0xaa   : > { %775 = vmatpush2.msra.mxu0 %v431_v2  ;;  %886 = vmatpush2.msra.mxu1 %v441_v4 }
  0xab   : > { %599 = vmatmul.mubr.f32.gmra.mxu0 %v2750_v5  ;;  %706 = vmatmul.mubr.f32.gmra.mxu1 %v2732_v58 }
  0xac   : > { %776 = vmatprep.subr.mxu0 %v424_v7  ;;  %887 = vmatprep.subr.mxu1 %v434_v8 }
  0xad   : > { %777 = vmatpush2.msra.mxu0 %v423_v9  ;;  %888 = vmatpush2.msra.mxu1 %v433_v10 }
  0xae   : > { %778 = vmatprep.subr.mxu0 %v416_v11  ;;  %889 = vmatprep.subr.mxu1 %v426_v12 }
  0xaf   : > { %2081 = vmatprep.mubr.msk.f32.mxu1 %vm467_vm1, %v2746_v1  ;;  %779 = vmatpush2.msra.mxu0 %v415_v14 }
  0xb0   : > { %890 = vmatpush2.msra.mxu1 %v425_v15  ;;  %780 = vmatprep.subr.mxu0 %v408_v17 }
  0xb1   : > { %712 = vmatmul.mubr.f32.gmra.mxu1 %v2750_v5  ;;  %891 = vmatprep.subr.mxu1 %v418_v18 }
  0xb2   : > { %781 = vmatpush2.msra.mxu0 %v407_v19  ;;  %2082 = vmatprep.mubr.msk.f32.mxu0 %vm467_vm1, %v2595_v29 }
  0xb3   : > { %892 = vmatpush2.msra.mxu1 %v417_v20  ;;  %783 = vmatmul.mubr.f32.vlgmr.msra.gmra.mxu0 %v2599_v32 }
  0xb4   : > { %893 = vmatprep.subr.mxu1 %v410_v21  ;;  %2090 = vmatprep.mubr.msk.f32.mxu1 %vm467_vm1, %v2595_v29 }
  0xb5   : > { %894 = vmatpush2.msra.mxu1 %v409_v22  ;;  %2083 = vmatprep.mubr.msk.f32.mxu0 %vm467_vm1, %v2641_v3 }
  0xb6   : > { %896 = vmatmul.mubr.f32.vlgmr.msra.gmra.mxu1 %v2599_v32 }
  0xb7   : > { %2091 = vmatprep.mubr.msk.f32.mxu1 %vm467_vm1, %v2641_v3  ;;  %789 = vmatmul.mubr.f32.gmra.mxu0 %v2645_v6 }
  0xb8   : > { %2084 = vmatprep.mubr.msk.f32.mxu0 %vm467_vm1, %v2656_v13 }
  0xba   : > { %902 = vmatmul.mubr.f32.gmra.mxu1 %v2645_v6 }
  0xbb   : > { %2092 = vmatprep.mubr.msk.f32.mxu1 %vm467_vm1, %v2656_v13  ;;  %795 = vmatmul.mubr.f32.gmra.mxu0 %v2660_v16 }
  0xbc   : > { %2085 = vmatprep.mubr.msk.f32.mxu0 %vm467_vm1, %v2674_v23 }
  0xbe   : > { %908 = vmatmul.mubr.f32.gmra.mxu1 %v2660_v16 }
  0xbf   : > { %2093 = vmatprep.mubr.msk.f32.mxu1 %vm467_vm1, %v2674_v23  ;;  %801 = vmatmul.mubr.f32.gmra.mxu0 %v2678_v26 }
  0xc0   : > { %2086 = vmatprep.mubr.msk.f32.mxu0 %vm467_vm1, %v2692_v35 }
  0xc2   : > { %914 = vmatmul.mubr.f32.gmra.mxu1 %v2678_v26 }
  0xc3   : > { %2094 = vmatprep.mubr.msk.f32.mxu1 %vm467_vm1, %v2692_v35  ;;  %807 = vmatmul.mubr.f32.gmra.mxu0 %v2696_v38 }
  0xc4   : > { %2087 = vmatprep.mubr.msk.f32.mxu0 %vm467_vm1, %v2710_v45 }
  0xc6   : > { %920 = vmatmul.mubr.f32.gmra.mxu1 %v2696_v38 }
  0xc7   : > { %2095 = vmatprep.mubr.msk.f32.mxu1 %vm467_vm1, %v2710_v45  ;;  %813 = vmatmul.mubr.f32.gmra.mxu0 %v2714_v48 }
  0xc8   : > { %2088 = vmatprep.mubr.msk.f32.mxu0 %vm467_vm1, %v2728_v55 }
  0xca   : > { %926 = vmatmul.mubr.f32.gmra.mxu1 %v2714_v48 }
  0xcb   : > { %2096 = vmatprep.mubr.msk.f32.mxu1 %vm467_vm1, %v2728_v55  ;;  %819 = vmatmul.mubr.f32.gmra.mxu0 %v2732_v58 }
  0xcc   : > { %2089 = vmatprep.mubr.msk.f32.mxu0 %vm467_vm1, %v2746_v1 }
  0xce   : > { %932 = vmatmul.mubr.f32.gmra.mxu1 %v2732_v58 }
  0xcf   : > { %2097 = vmatprep.mubr.msk.f32.mxu1 %vm467_vm1, %v2746_v1  ;;  %825 = vmatmul.mubr.f32.gmra.mxu0 %v2750_v5 }
  0xd2   : > { %938 = vmatmul.mubr.f32.gmra.mxu1 %v2750_v5 }
 0x134   : > { %v558_v29 = vpop.f32.mrf.mxu0 }
 0x135   : > { %1208 = vst [vmem:[%s2824_s23] sm:$0xff] %v558_v29  ;;  %v1049_v41 = vmul.f32 %v558_v29, %v558_v29 }
 0x136   : > { %v560_v32 = vpop.f32.mrf.mxu0 }
 0x137   : > { %1209 = vst [vmem:[%s2824_s23 + $0x8] sm:$0xff] %v560_v32  ;;  %v2828_v3 = vpop.f32.mrf.mxu1  ;;  %v1050_v42 = vmul.f32 %v560_v32, %v560_v32  ;;  %v952_v49 = vadd.f32 %v560_v32, %v558_v29 }
 0x138   : > { %1210 = vst [vmem:[%s2824_s23 + $0x10] sm:$0xff] %v2828_v3  ;;  %v1051_v51 = vmul.f32 %v2828_v3, %v2828_v3 }
 0x139   : > { %v2832_v6 = vpop.f32.mrf.mxu1  ;;  %v1113_v50 = vadd.f32 %v1050_v42, %v1049_v41  ;;  %v953_v61 = vadd.f32 %v952_v49, %v2828_v3 }
 0x13a   : > { %1211 = vst [vmem:[%s2824_s23 + $0x18] sm:$0xff] %v2832_v6  ;;  %v1052_v1 = vmul.f32 %v2832_v6, %v2832_v6 }
 0x13b   : > { %v1114_v62 = vadd.f32 %v1113_v50, %v1051_v51  ;;  %v954_v17 = vadd.f32 %v953_v61, %v2832_v6 }
 0x13d   : > { %v1115_v3 = vadd.f32 %v1114_v62, %v1052_v1 }
 0x147   : > { %v564_v13 = vpop.f32.mrf.mxu0 }
 0x148   : > { %1216 = vst [vmem:[%s2824_s23 + $0x40] sm:$0xff] %v564_v13  ;;  %v1057_v45 = vmul.f32 %v564_v13, %v564_v13 }
 0x149   : > { %v566_v16 = vpop.f32.mrf.mxu0 }
 0x14a   : > { %1217 = vst [vmem:[%s2824_s23 + $0x48] sm:$0xff] %v566_v16  ;;  %v1058_v46 = vmul.f32 %v566_v16, %v566_v16  ;;  %v961_v52 = vadd.f32 %v566_v16, %v564_v13 }
 0x14c   : > { %v1122_v53 = vadd.f32 %v1058_v46, %v1057_v45 }
 0x14d   : > { %v570_v23 = vpop.f32.mrf.mxu0  ;;  %v677_v24 = vpop.f32.mrf.mxu1 }
 0x14e   : > { %1224 = vst [vmem:[%s2824_s23 + $0x80] sm:$0xff] %v570_v23  ;;  %1218 = vst [vmem:[%s2824_s23 + $0x50] sm:$0xff] %v677_v24  ;;  %v1065_v54 = vmul.f32 %v570_v23, %v570_v23  ;;  %v1059_v55 = vmul.f32 %v677_v24, %v677_v24  ;;  %v962_v2 = vadd.f32 %v961_v52, %v677_v24 }
 0x14f   : > { %v572_v25 = vpop.f32.mrf.mxu0  ;;  %v2841_v26 = vpop.f32.mrf.mxu1 }
 0x150   : > { %1225 = vst [vmem:[%s2824_s23 + $0x88] sm:$0xff] %v572_v25  ;;  %1219 = vst [vmem:[%s2824_s23 + $0x58] sm:$0xff] %v2841_v26  ;;  %v1066_v56 = vmul.f32 %v572_v25, %v572_v25  ;;  %v970_v63 = vadd.f32 %v572_v25, %v570_v23  ;;  %v1123_v8 = vadd.f32 %v1122_v53, %v1059_v55 }
 0x151   : > { %v1060_v10 = vmul.f32 %v2841_v26, %v2841_v26  ;;  %v963_v6 = vadd.f32 %v962_v2, %v2841_v26 }
 0x152   : > { %v1131_v9 = vadd.f32 %v1066_v56, %v1065_v54 }
 0x153   : > { %v2845_v27 = vpop.f32.mrf.mxu0  ;;  %v2849_v28 = vpop.f32.mrf.mxu1  ;;  %v1124_v13 = vadd.f32 %v1123_v8, %v1060_v10 }
 0x154   : > { %1232 = vst [vmem:[%s2824_s23 + $0xc0] sm:$0xff] %v2845_v27  ;;  %1226 = vst [vmem:[%s2824_s23 + $0x90] sm:$0xff] %v2849_v28  ;;  %v1073_v58 = vmul.f32 %v2845_v27, %v2845_v27  ;;  %v1067_v11 = vmul.f32 %v2849_v28, %v2849_v28  ;;  %v971_v18 = vadd.f32 %v970_v63, %v2849_v28 }
 0x155   : > { %v578_v30 = vpop.f32.mrf.mxu0  ;;  %v2854_v31 = vpop.f32.mrf.mxu1 }
 0x156   : > { %1233 = vst [vmem:[%s2824_s23 + $0xc8] sm:$0xff] %v578_v30  ;;  %1227 = vst [vmem:[%s2824_s23 + $0x98] sm:$0xff] %v2854_v31  ;;  %v1074_v59 = vmul.f32 %v578_v30, %v578_v30  ;;  %v979_v12 = vadd.f32 %v578_v30, %v2845_v27  ;;  %v1132_v16 = vadd.f32 %v1131_v9, %v1067_v11 }
 0x157   : > { %v1068_v24 = vmul.f32 %v2854_v31, %v2854_v31 }
 0x158   : > { %v1140_v14 = vadd.f32 %v1074_v59, %v1073_v58 }
 0x159   : > { %v582_v33 = vpop.f32.mrf.mxu0  ;;  %v2859_v34 = vpop.f32.mrf.mxu1  ;;  %v1133_v53 = vadd.f32 %v1132_v16, %v1068_v24 }
 0x15a   : > { %1240 = vst [vmem:[%s2824_s23 + $0x100] sm:$0xff] %v582_v33  ;;  %1234 = vst [vmem:[%s2824_s23 + $0xd0] sm:$0xff] %v2859_v34  ;;  %v1081_v4 = vmul.f32 %v582_v33, %v582_v33  ;;  %v1075_v15 = vmul.f32 %v2859_v34, %v2859_v34  ;;  %v980_v25 = vadd.f32 %v979_v12, %v2859_v34 }
 0x15b   : > { %v584_v35 = vpop.f32.mrf.mxu0  ;;  %v2864_v36 = vpop.f32.mrf.mxu1 }
 0x15c   : > { %1241 = vst [vmem:[%s2824_s23 + $0x108] sm:$0xff] %v584_v35  ;;  %1235 = vst [vmem:[%s2824_s23 + $0xd8] sm:$0xff] %v2864_v36  ;;  %v1082_v5 = vmul.f32 %v584_v35, %v584_v35  ;;  %v988_v19 = vadd.f32 %v584_v35, %v582_v33  ;;  %v1141_v27 = vadd.f32 %v1140_v14, %v1075_v15 }
 0x15d   : > { %v1076_v28 = vmul.f32 %v2864_v36, %v2864_v36  ;;  %v972_v33 = vadd.f32 %v971_v18, %v2854_v31  ;;  %v981_v54 = vadd.f32 %v980_v25, %v2864_v36 }
 0x15e   : > { %v1149_v21 = vadd.f32 %v1082_v5, %v1081_v4 }
 0x15f   : > { %v2868_v37 = vpop.f32.mrf.mxu0  ;;  %v2872_v38 = vpop.f32.mrf.mxu1 }
 0x160   : > { %1248 = vst [vmem:[%s2824_s23 + $0x140] sm:$0xff] %v2868_v37  ;;  %1242 = vst [vmem:[%s2824_s23 + $0x110] sm:$0xff] %v2872_v38  ;;  %v1089_v22 = vmul.f32 %v2868_v37, %v2868_v37  ;;  %v1083_v29 = vmul.f32 %v2872_v38, %v2872_v38  ;;  %v989_v26 = vadd.f32 %v988_v19, %v2872_v38 }
 0x161   : > { %v2876_v39 = vpop.f32.mrf.mxu0  ;;  %v2880_v40 = vpop.f32.mrf.mxu1 }
 0x162   : > { %1249 = vst [vmem:[%s2824_s23 + $0x148] sm:$0xff] %v2876_v39  ;;  %1243 = vst [vmem:[%s2824_s23 + $0x118] sm:$0xff] %v2880_v40  ;;  %v1090_v32 = vmul.f32 %v2876_v39, %v2876_v39  ;;  %v1150_v42 = vadd.f32 %v1149_v21, %v1083_v29  ;;  %v997_v34 = vadd.f32 %v2876_v39, %v2868_v37 }
 0x163   : > { %v1084_v46 = vmul.f32 %v2880_v40, %v2880_v40  ;;  %v2964_v37 = vadd.f32 %v1141_v27, %v1076_v28  ;;  %v2967_v58 = vadd.f32 %v989_v26, %v2880_v40 }
 0x164   : > { %v1158_v45 = vadd.f32 %v1090_v32, %v1089_v22 }
 0x165   : > { %v2884_v43 = vpop.f32.mrf.mxu0  ;;  %v2888_v44 = vpop.f32.mrf.mxu1  ;;  %v2976_v40 = vadd.f32 %v1150_v42, %v1084_v46 }
 0x166   : > { %1256 = vst [vmem:[%s2824_s23 + $0x180] sm:$0xff] %v2884_v43  ;;  %1250 = vst [vmem:[%s2824_s23 + $0x150] sm:$0xff] %v2888_v44  ;;  %v1091_v31 = vmul.f32 %v2888_v44, %v2888_v44  ;;  %v1097_v63 = vmul.f32 %v2884_v43, %v2884_v43  ;;  %v998_v36 = vadd.f32 %v997_v34, %v2888_v44 }
 0x167   : > { %v2892_v47 = vpop.f32.mrf.mxu0  ;;  %v2896_v48 = vpop.f32.mrf.mxu1 }
 0x168   : > { %1257 = vst [vmem:[%s2824_s23 + $0x188] sm:$0xff] %v2892_v47  ;;  %1251 = vst [vmem:[%s2824_s23 + $0x158] sm:$0xff] %v2896_v48  ;;  %v1098_v1 = vmul.f32 %v2892_v47, %v2892_v47  ;;  %v1159_v8 = vadd.f32 %v1158_v45, %v1091_v31  ;;  %v1092_v18 = vmul.f32 %v2896_v48, %v2896_v48 }
 0x169   : > { %v1006_v29 = vadd.f32 %v2892_v47, %v2884_v43 }
 0x16a   : > { %v1167_v32 = vadd.f32 %v1098_v1, %v1097_v63 }
 0x16b   : > { %v2902_v57 = vpop.f32.mrf.mxu0  ;;  %v2908_v60 = vpop.f32.mrf.mxu1 }
 0x16c   : > { %1264 = vst [vmem:[%s2824_s23 + $0x1c0] sm:$0xff] %v2902_v57  ;;  %1258 = vst [vmem:[%s2824_s23 + $0x190] sm:$0xff] %v2908_v60  ;;  %v1105_v45 = vmul.f32 %v2902_v57, %v2902_v57 }
 0x16d   : > { %v2913_v0 = vpop.f32.mrf.mxu0  ;;  %v2919_v7 = vpop.f32.mrf.mxu1 }
 0x16e   : > { %1265 = vst [vmem:[%s2824_s23 + $0x1c8] sm:$0xff] %v2913_v0  ;;  %1259 = vst [vmem:[%s2824_s23 + $0x198] sm:$0xff] %v2919_v7 }
 0x171   : > { %v2932_v20 = vpop.f32.mrf.mxu1 }
 0x172   : > { %1266 = vst [vmem:[%s2824_s23 + $0x1d0] sm:$0xff] %v2932_v20 }
 0x173   : > { %v2943_v23 = vpop.f32.mrf.mxu1  ;;  %v784_v30 = vpop.f32.mrf.mxu0 }
 0x174   : > { %1267 = vst [vmem:[%s2824_s23 + $0x1d8] sm:$0xff] %v2943_v23  ;;  %v955_v35 = vadd.f32 %v954_v17, %v784_v30  ;;  %v1053_v41 = vmul.f32 %v784_v30, %v784_v30  ;;  %1212 = vst [vmem:[%s2824_s23 + $0x20] sm:$0xff] %v784_v30 }
 0x175   : > { %v786_v49 = vpop.f32.mrf.mxu0 }
 0x176   : > { %v897_v50 = vpop.f32.mrf.mxu1  ;;  %v1116_v51 = vadd.f32 %v1115_v3, %v1053_v41  ;;  %v956_v38 = vadd.f32 %v955_v35, %v786_v49  ;;  %v1054_v52 = vmul.f32 %v786_v49, %v786_v49  ;;  %1213 = vst [vmem:[%s2824_s23 + $0x28] sm:$0xff] %v786_v49  ;;  %v2987_v3 = vadd.f32 %v998_v36, %v2896_v48 }
 0x177   : > { %1214 = vst [vmem:[%s2824_s23 + $0x30] sm:$0xff] %v897_v50  ;;  %v1055_v39 = vmul.f32 %v897_v50, %v897_v50  ;;  %v790_v55 = vpop.f32.mrf.mxu0  ;;  %v2991_v48 = vadd.f32 %v1159_v8, %v1092_v18  ;;  %v1099_v41 = vmul.f32 %v2908_v60, %v2908_v60  ;;  %v1107_v18 = vmul.f32 %v2932_v20, %v2932_v20 }
 0x178   : > { %v899_v56 = vpop.f32.mrf.mxu1  ;;  %v964_v59 = vadd.f32 %v963_v6, %v790_v55  ;;  %v1061_v61 = vmul.f32 %v790_v55, %v790_v55  ;;  %1220 = vst [vmem:[%s2824_s23 + $0x60] sm:$0xff] %v790_v55  ;;  %v957_v62 = vadd.f32 %v956_v38, %v897_v50  ;;  %v1117_v5 = vadd.f32 %v1116_v51, %v1054_v52 }
 0x179   : > { %1215 = vst [vmem:[%s2824_s23 + $0x38] sm:$0xff] %v899_v56  ;;  %v792_v2 = vpop.f32.mrf.mxu0  ;;  %v1056_v16 = vmul.f32 %v899_v56, %v899_v56  ;;  %v1007_v38 = vadd.f32 %v1006_v29, %v2908_v60  ;;  %v1168_v63 = vadd.f32 %v1167_v32, %v1099_v41  ;;  %v1015_v60 = vadd.f32 %v2913_v0, %v2902_v57 }
 0x17a   : > { %v903_v4 = vpop.f32.mrf.mxu1  ;;  %v1125_v9 = vadd.f32 %v1124_v13, %v1061_v61  ;;  %v1062_v10 = vmul.f32 %v792_v2, %v792_v2  ;;  %1221 = vst [vmem:[%s2824_s23 + $0x68] sm:$0xff] %v792_v2  ;;  %v965_v11 = vadd.f32 %v964_v59, %v792_v2  ;;  %v958_v44 = vadd.f32 %v957_v62, %v899_v56 }
 0x17b   : > { %1222 = vst [vmem:[%s2824_s23 + $0x70] sm:$0xff] %v903_v4  ;;  %v1063_v12 = vmul.f32 %v903_v4, %v903_v4  ;;  %v796_v14 = vpop.f32.mrf.mxu0  ;;  %v1118_v17 = vadd.f32 %v1117_v5, %v1055_v39  ;;  %v1106_v39 = vmul.f32 %v2913_v0, %v2913_v0 }
 0x17c   : > { %v905_v15 = vpop.f32.mrf.mxu1  ;;  %v973_v19 = vadd.f32 %v972_v33, %v796_v14  ;;  %v1069_v21 = vmul.f32 %v796_v14, %v796_v14  ;;  %1228 = vst [vmem:[%s2824_s23 + $0xa0] sm:$0xff] %v796_v14  ;;  %v1126_v22 = vadd.f32 %v1125_v9, %v1062_v10  ;;  %959 = vadd.xlane.f32.xlu0 %v958_v44 }
 0x17d   : > { %1223 = vst [vmem:[%s2824_s23 + $0x78] sm:$0xff] %v905_v15  ;;  %v798_v6 = vpop.f32.mrf.mxu0  ;;  %v1064_v28 = vmul.f32 %v905_v15, %v905_v15  ;;  %v1119_v26 = vadd.f32 %v1118_v17, %v1056_v16  ;;  %v966_v35 = vadd.f32 %v965_v11, %v903_v4  ;;  %v1008_v10 = vadd.f32 %v1007_v38, %v2919_v7 }
 0x17e   : > { %v909_v13 = vpop.f32.mrf.mxu1  ;;  %v1134_v24 = vadd.f32 %v1133_v53, %v1069_v21  ;;  %v974_v25 = vadd.f32 %v973_v19, %v798_v6  ;;  %v1070_v27 = vmul.f32 %v798_v6, %v798_v6  ;;  %1229 = vst [vmem:[%s2824_s23 + $0xa8] sm:$0xff] %v798_v6  ;;  %v1127_v47 = vadd.f32 %v1126_v22, %v1063_v12 }
 0x17f   : > { %1230 = vst [vmem:[%s2824_s23 + $0xb0] sm:$0xff] %v909_v13  ;;  %v802_v30 = vpop.f32.mrf.mxu0  ;;  %v1071_v33 = vmul.f32 %v909_v13, %v909_v13  ;;  %v967_v56 = vadd.f32 %v966_v35, %v905_v15  ;;  %v1100_v12 = vmul.f32 %v2919_v7, %v2919_v7  ;;  %v1016_v16 = vadd.f32 %v1015_v60, %v2932_v20 }
 0x180   : > { %v911_v43 = vpop.f32.mrf.mxu1  ;;  %v982_v42 = vadd.f32 %v981_v54, %v802_v30  ;;  %v1077_v34 = vmul.f32 %v802_v30, %v802_v30  ;;  %1236 = vst [vmem:[%s2824_s23 + $0xe0] sm:$0xff] %v802_v30  ;;  %1120 = vadd.xlane.f32.xlu0 %v1119_v26  ;;  %v1128_v49 = vadd.f32 %v1127_v47, %v1064_v28 }
 0x181   : > { %1231 = vst [vmem:[%s2824_s23 + $0xb8] sm:$0xff] %v911_v43  ;;  %v804_v46 = vpop.f32.mrf.mxu0  ;;  %v975_v31 = vadd.f32 %v974_v25, %v909_v13  ;;  %v1135_v51 = vadd.f32 %v1134_v24, %v1070_v27  ;;  %v1072_v61 = vmul.f32 %v911_v43, %v911_v43  ;;  %v1169_v27 = vadd.f32 %v1168_v63, %v1100_v12 }
 0x182   : > { %v915_v50 = vpop.f32.mrf.mxu1  ;;  %v1143_v52 = vadd.f32 %v2964_v37, %v1077_v34  ;;  %v983_v53 = vadd.f32 %v982_v42, %v804_v46  ;;  %v1078_v54 = vmul.f32 %v804_v46, %v804_v46  ;;  %1237 = vst [vmem:[%s2824_s23 + $0xe8] sm:$0xff] %v804_v46  ;;  %1129 = vadd.xlane.f32.xlu1 %v1128_v49 }
 0x183   : > { %1238 = vst [vmem:[%s2824_s23 + $0xf0] sm:$0xff] %v915_v50  ;;  %v808_v55 = vpop.f32.mrf.mxu0  ;;  %v1136_v62 = vadd.f32 %v1135_v51, %v1071_v33  ;;  %v1079_v1 = vmul.f32 %v915_v50, %v915_v50  ;;  %v976_v4 = vadd.f32 %v975_v31, %v911_v43  ;;  %v1108_v35 = vmul.f32 %v2943_v23, %v2943_v23 }
 0x184   : > { %v917_v59 = vpop.f32.mrf.mxu1  ;;  %v991_v37 = vadd.f32 %v2967_v58, %v808_v55  ;;  %v1085_v36 = vmul.f32 %v808_v55, %v808_v55  ;;  %1244 = vst [vmem:[%s2824_s23 + $0x120] sm:$0xff] %v808_v55  ;;  %968 = vadd.xlane.f32.xlu0 %v967_v56  ;;  %v984_v8 = vadd.f32 %v983_v53, %v915_v50 }
 0x185   : > { %1239 = vst [vmem:[%s2824_s23 + $0xf8] sm:$0xff] %v917_v59  ;;  %v810_v2 = vpop.f32.mrf.mxu0  ;;  %v1144_v9 = vadd.f32 %v1143_v52, %v1078_v54  ;;  %v1176_v58 = vadd.f32 %v1106_v39, %v1105_v45  ;;  %v1137_v44 = vadd.f32 %v1136_v62, %v1072_v61  ;;  %v1080_v32 = vmul.f32 %v917_v59, %v917_v59 }
 0x186   : > { %v921_v5 = vpop.f32.mrf.mxu1  ;;  %v1152_v11 = vadd.f32 %v2976_v40, %v1085_v36  ;;  %v992_v57 = vadd.f32 %v991_v37, %v810_v2  ;;  %v1086_v0 = vmul.f32 %v810_v2, %v810_v2  ;;  %1245 = vst [vmem:[%s2824_s23 + $0x128] sm:$0xff] %v810_v2  ;;  %977 = vadd.xlane.f32.xlu1 %v976_v4 }
 0x187   : > { %1246 = vst [vmem:[%s2824_s23 + $0x130] sm:$0xff] %v921_v5  ;;  %v814_v14 = vpop.f32.mrf.mxu0  ;;  %v1087_v15 = vmul.f32 %v921_v5, %v921_v5  ;;  %v985_v29 = vadd.f32 %v984_v8, %v917_v59  ;;  %v1145_v6 = vadd.f32 %v1144_v9, %v1079_v1  ;;  %v1177_v47 = vadd.f32 %v1176_v58, %v1107_v18  ;;  %v944_v18 = vld [vmem:[#allocation2] sm:$0xff] }
 0x188   : > { %v923_v17 = vpop.f32.mrf.mxu1  ;;  %v1000_v19 = vadd.f32 %v2987_v3, %v814_v14  ;;  %v1093_v40 = vmul.f32 %v814_v14, %v814_v14  ;;  %1252 = vst [vmem:[%s2824_s23 + $0x160] sm:$0xff] %v814_v14  ;;  %v993_v21 = vadd.f32 %v992_v57, %v921_v5  ;;  %1138 = vadd.xlane.f32.xlu0 %v1137_v44 }
 0x189   : > { %1247 = vst [vmem:[%s2824_s23 + $0x138] sm:$0xff] %v923_v17  ;;  %v816_v22 = vpop.f32.mrf.mxu0  ;;  %v1153_v13 = vadd.f32 %v1152_v11, %v1086_v0  ;;  %v1088_v26 = vmul.f32 %v923_v17, %v923_v17  ;;  %v1146_v34 = vadd.f32 %v1145_v6, %v1080_v32  ;;  %v1017_v50 = vadd.f32 %v1016_v16, %v2943_v23  ;;  %v945_v6 = vld [vmem:[#allocation2 + $0x8] sm:$0xff] }
 0x18a   : > { %v927_v7 = vpop.f32.mrf.mxu1  ;;  %v1161_v24 = vadd.f32 %v2991_v48, %v1093_v40  ;;  %v1001_v25 = vadd.f32 %v1000_v19, %v816_v22  ;;  %v1094_v3 = vmul.f32 %v816_v22, %v816_v22  ;;  %1253 = vst [vmem:[%s2824_s23 + $0x168] sm:$0xff] %v816_v22  ;;  %986 = vadd.xlane.f32.xlu1 %v985_v29  ;;  %v1042_v29 = vld [vmem:[#allocation3 + $0x8] sm:$0xff] }
 0x18b   : > { %1254 = vst [vmem:[%s2824_s23 + $0x170] sm:$0xff] %v927_v7  ;;  %v820_v28 = vpop.f32.mrf.mxu0  ;;  %v994_v30 = vadd.f32 %v993_v21, %v923_v17  ;;  %v1154_v43 = vadd.f32 %v1153_v13, %v1087_v15  ;;  %v1095_v41 = vmul.f32 %v927_v7, %v927_v7  ;;  %v1178_v55 = vadd.f32 %v1177_v47, %v1108_v35  ;;  %v1041_v21 = vld [vmem:[#allocation3] sm:$0xff] }
 0x18c   : > { %v929_v33 = vpop.f32.mrf.mxu1  ;;  %v1009_v20 = vadd.f32 %v1008_v10, %v820_v28  ;;  %v1101_v48 = vmul.f32 %v820_v28, %v820_v28  ;;  %1260 = vst [vmem:[%s2824_s23 + $0x1a0] sm:$0xff] %v820_v28  ;;  %v1002_v46 = vadd.f32 %v1001_v25, %v927_v7  ;;  %v1162_v49 = vadd.f32 %v1161_v24, %v1094_v3  ;;  %v946_v24 = vld [vmem:[#allocation2 + $0x10] sm:$0xff]  ;;  %v948_v47 = vld [vmem:[#allocation2 + $0x20] sm:$0xff] }
 0x18d   : > { %1255 = vst [vmem:[%s2824_s23 + $0x178] sm:$0xff] %v929_v33  ;;  %995 = vadd.xlane.f32.xlu0 %v994_v30  ;;  %v822_v42 = vpop.f32.mrf.mxu0  ;;  %v1155_v54 = vadd.f32 %v1154_v43, %v1088_v26  ;;  %v1096_v60 = vmul.f32 %v929_v33, %v929_v33 }
 0x18e   : > { %v933_v45 = vpop.f32.mrf.mxu1  ;;  %v1170_v31 = vadd.f32 %v1169_v27, %v1101_v48  ;;  %v1010_v51 = vadd.f32 %v1009_v20, %v822_v42  ;;  %v1102_v38 = vmul.f32 %v822_v42, %v822_v42  ;;  %1261 = vst [vmem:[%s2824_s23 + $0x1a8] sm:$0xff] %v822_v42  ;;  %1147 = vadd.xlane.f32.xlu1 %v1146_v34  ;;  %v1043_v27 = vld [vmem:[#allocation3 + $0x10] sm:$0xff]  ;;  %v1044_v48 = vld [vmem:[#allocation3 + $0x18] sm:$0xff]  ;;  %v1045_v34 = vld [vmem:[#allocation3 + $0x20] sm:$0xff] }
 0x18f   : > { %1262 = vst [vmem:[%s2824_s23 + $0x1b0] sm:$0xff] %v933_v45  ;;  %v826_v52 = vpop.f32.mrf.mxu0  ;;  %v1103_v53 = vmul.f32 %v933_v45, %v933_v45  ;;  %v1003_v62 = vadd.f32 %v1002_v46, %v929_v33  ;;  %v1163_v37 = vadd.f32 %v1162_v49, %v1095_v41  ;;  %v947_v33 = vld [vmem:[#allocation2 + $0x18] sm:$0xff]  ;;  %v949_v49 = vld [vmem:[#allocation2 + $0x28] sm:$0xff] }
 0x190   : > { %v935_v39 = vpop.f32.mrf.mxu1  ;;  %v1018_v56 = vadd.f32 %v1017_v50, %v826_v52  ;;  %v1109_v59 = vmul.f32 %v826_v52, %v826_v52  ;;  %1268 = vst [vmem:[%s2824_s23 + $0x1e0] sm:$0xff] %v826_v52  ;;  %v1011_v61 = vadd.f32 %v1010_v51, %v933_v45  ;;  %v1171_v36 = vadd.f32 %v1170_v31, %v1102_v38  ;;  %v950_v51 = vld [vmem:[#allocation2 + $0x30] sm:$0xff] }
 0x191   : > { %1263 = vst [vmem:[%s2824_s23 + $0x1b8] sm:$0xff] %v935_v39  ;;  %1156 = vadd.xlane.f32.xlu0 %v1155_v54  ;;  %v828_v23 = vpop.f32.mrf.mxu0  ;;  %v1104_v9 = vmul.f32 %v935_v39, %v935_v39  ;;  %v1164_v0 = vadd.f32 %v1163_v37, %v1096_v60  ;;  %v1048_v60 = vld [vmem:[#allocation3 + $0x38] sm:$0xff] }
 0x192   : > { %v939_v63 = vpop.f32.mrf.mxu1  ;;  %v1179_v1 = vadd.f32 %v1178_v55, %v1109_v59  ;;  %v1019_v2 = vadd.f32 %v1018_v56, %v828_v23  ;;  %v1110_v4 = vmul.f32 %v828_v23, %v828_v23  ;;  %1269 = vst [vmem:[%s2824_s23 + $0x1e8] sm:$0xff] %v828_v23  ;;  %1004 = vadd.xlane.f32.xlu1 %v1003_v62  ;;  %v1047_v55 = vld [vmem:[#allocation3 + $0x30] sm:$0xff] }
 0x193   : > { %1270 = vst [vmem:[%s2824_s23 + $0x1f0] sm:$0xff] %v939_v63  ;;  %v1012_v5 = vadd.f32 %v1011_v61, %v935_v39  ;;  %v1172_v10 = vadd.f32 %v1171_v36, %v1103_v53  ;;  %v1111_v57 = vmul.f32 %v939_v63, %v939_v63  ;;  %v1046_v53 = vld [vmem:[#allocation3 + $0x28] sm:$0xff]  ;;  %v951_v61 = vld [vmem:[#allocation2 + $0x38] sm:$0xff] }
 0x194   : > { %v941_v8 = vpop.f32.mrf.mxu1  ;;  %v1180_v11 = vadd.f32 %v1179_v1, %v1110_v4  ;;  %v1020_v58 = vadd.f32 %v1019_v2, %v939_v63 }
 0x195   : > { %1271 = vst [vmem:[%s2824_s23 + $0x1f8] sm:$0xff] %v941_v8  ;;  %1013 = vadd.xlane.f32.xlu0 %v1012_v5  ;;  %v1173_v12 = vadd.f32 %v1172_v10, %v1104_v9  ;;  %v1112_v14 = vmul.f32 %v941_v8, %v941_v8 }
 0x196   : > { %1165 = vadd.xlane.f32.xlu1 %v1164_v0  ;;  %v1021_v15 = vadd.f32 %v1020_v58, %v941_v8  ;;  %v1181_v44 = vadd.f32 %v1180_v11, %v1111_v57 }
 0x198   : > { %v1182_v17 = vadd.f32 %v1181_v44, %v1112_v14 }
 0x199   : > { %1174 = vadd.xlane.f32.xlu0 %v1173_v12 }
 0x19a   : > { %1022 = vadd.xlane.f32.xlu1 %v1021_v15 }
 0x19e   : > { %1183 = vadd.xlane.f32.xlu1 %v1182_v17 }
 0x205   : > { %v960_v19 = vpop.xlane.xlu0 %959 }
 0x206   : > { %v1024_v40 = vadd.f32 %v960_v19, %v944_v18 }
 0x208   : > { %1033 = vst.msk [vmem:[#allocation2] sm:$0xff] %vm1032_vm2, %v1024_v40 }
 0x209   : > { %v1121_v22 = vpop.xlane.xlu0 %1120 }
 0x20a   : > { %v1185_v7 = vadd.f32 %v1121_v22, %v1041_v21 }
 0x20b   : > { %v1130_v32 = vpop.xlane.xlu1 %1129 }
 0x20c   : > { %1193 = vst.msk [vmem:[#allocation3] sm:$0xff] %vm1032_vm2, %v1185_v7  ;;  %v1186_v13 = vadd.f32 %v1130_v32, %v1042_v29 }
 0x20d   : > { %v969_v16 = vpop.xlane.xlu0 %968 }
 0x20e   : > { %1194 = vst.msk [vmem:[#allocation3 + $0x8] sm:$0xff] %vm1032_vm2, %v1186_v13  ;;  %v1025_v25 = vadd.f32 %v969_v16, %v945_v6 }
 0x20f   : > { %v978_v3 = vpop.xlane.xlu1 %977 }
 0x210   : > { %1034 = vst.msk [vmem:[#allocation2 + $0x8] sm:$0xff] %vm1032_vm2, %v1025_v25  ;;  %v1026_v28 = vadd.f32 %v978_v3, %v946_v24 }
 0x211   : > { %v1139_v30 = vpop.xlane.xlu0 %1138 }
 0x212   : > { %1035 = vst.msk [vmem:[#allocation2 + $0x10] sm:$0xff] %vm1032_vm2, %v1026_v28  ;;  %v1187_v26 = vadd.f32 %v1139_v30, %v1043_v27 }
 0x213   : > { %v987_v43 = vpop.xlane.xlu1 %986 }
 0x214   : > { %1195 = vst.msk [vmem:[#allocation3 + $0x10] sm:$0xff] %vm1032_vm2, %v1187_v26  ;;  %v1027_v35 = vadd.f32 %v987_v43, %v947_v33 }
 0x216   : > { %v996_v20 = vpop.xlane.xlu0 %995  ;;  %1036 = vst.msk [vmem:[#allocation2 + $0x18] sm:$0xff] %vm1032_vm2, %v1027_v35 }
 0x217   : > { %v1028_v41 = vadd.f32 %v996_v20, %v948_v47  ;;  %v1148_v42 = vpop.xlane.xlu1 %1147 }
 0x218   : > { %v1188_v45 = vadd.f32 %v1148_v42, %v1044_v48 }
 0x219   : > { %1037 = vst.msk [vmem:[#allocation2 + $0x20] sm:$0xff] %vm1032_vm2, %v1028_v41 }
 0x21a   : > { %v1157_v46 = vpop.xlane.xlu0 %1156  ;;  %1196 = vst.msk [vmem:[#allocation3 + $0x18] sm:$0xff] %vm1032_vm2, %v1188_v45 }
 0x21b   : > { %v1189_v50 = vadd.f32 %v1157_v46, %v1045_v34  ;;  %v1005_v31 = vpop.xlane.xlu1 %1004 }
 0x21c   : > { %v1029_v38 = vadd.f32 %v1005_v31, %v949_v49 }
 0x21d   : > { %1197 = vst.msk [vmem:[#allocation3 + $0x20] sm:$0xff] %vm1032_vm2, %v1189_v50 }
 0x21e   : > { %v1014_v52 = vpop.xlane.xlu0 %1013  ;;  %1038 = vst.msk [vmem:[#allocation2 + $0x28] sm:$0xff] %vm1032_vm2, %v1029_v38 }
 0x21f   : > { %v1030_v54 = vadd.f32 %v1014_v52, %v950_v51  ;;  %v1166_v39 = vpop.xlane.xlu1 %1165 }
 0x220   : > { %v1190_v56 = vadd.f32 %v1166_v39, %v1046_v53 }
 0x221   : > { %1039 = vst.msk [vmem:[#allocation2 + $0x30] sm:$0xff] %vm1032_vm2, %v1030_v54 }
 0x222   : > { %v1175_v59 = vpop.xlane.xlu0 %1174  ;;  %1198 = vst.msk [vmem:[#allocation3 + $0x28] sm:$0xff] %vm1032_vm2, %v1190_v56 }
 0x223   : > { %v1191_v23 = vadd.f32 %v1175_v59, %v1047_v55  ;;  %v1023_v62 = vpop.xlane.xlu1 %1022 }
 0x224   : > { %v1031_v63 = vadd.f32 %v1023_v62, %v951_v61 }
 0x225   : > { %1199 = vst.msk [vmem:[#allocation3 + $0x30] sm:$0xff] %vm1032_vm2, %v1191_v23 }
 0x226   : > { %1040 = vst.msk [vmem:[#allocation2 + $0x38] sm:$0xff] %vm1032_vm2, %v1031_v63  ;;  %1276 = sbr.rel (!%p1272_p1) target bundleno = 800 (0x320), region = 52 }
 0x227   : > { %v1184_v37 = vpop.xlane.xlu1 %1183 }
 0x228   : > { %v1192_v36 = vadd.f32 %v1184_v37, %v1048_v60 }
 0x22a   : > { %1200 = vst.msk [vmem:[#allocation3 + $0x38] sm:$0xff] %vm1032_vm2, %v1192_v36 }
 0x22b   : > { %v1279_v1 = vld [vmem:[#allocation2 + $0x10] sm:$0xff]  ;;  %v2355_v4 = vmov 0   ;;  %v1277_v9 = vld [vmem:[#allocation2] sm:$0xff]  ;;  %v1280_v0 = vld [vmem:[#allocation2 + $0x18] sm:$0xff] }
 0x22c   : > { %v1295_v2 = vld [vmem:[#allocation3 + $0x10] sm:$0xff]  ;;  %2193 = vset.pattern.permute.xlu1 %v2355_v4  ;;  %2192 = vset.pattern.permute.xlu0 %v2355_v4  ;;  %v3056_v5 = vmul.f32 0.00048828125, %v1279_v1  ;;  %v1293_v10 = vld [vmem:[#allocation3] sm:$0xff]  ;;  %v3058_v11 = vmul.f32 0.00048828125, %v1277_v9  ;;  %v1296_v58 = vld [vmem:[#allocation3 + $0x18] sm:$0xff]  ;;  %v3062_v14 = vmul.f32 0.00048828125, %v1280_v0 }
 0x22d   : > { %v1303_v8 = vmul.f32 0.00048828125, %v1295_v2  ;;  %v1301_v57 = vmul.f32 0.00048828125, %v1293_v10  ;;  %v1304_v15 = vmul.f32 0.00048828125, %v1296_v58  ;;  %v1278_v44 = vld [vmem:[#allocation2 + $0x8] sm:$0xff]  ;;  %v1281_v13 = vld [vmem:[#allocation2 + $0x20] sm:$0xff]  ;;  %v1284_v28 = vld [vmem:[#allocation2 + $0x38] sm:$0xff] }
 0x22e   : > { %v1311_v12 = vmul.f32 %v3056_v5, %v3056_v5  ;;  %v1294_v17 = vld [vmem:[#allocation3 + $0x8] sm:$0xff]  ;;  %v1309_v18 = vmul.f32 %v3058_v11, %v3058_v11  ;;  %v3066_v19 = vmul.f32 0.00048828125, %v1278_v44  ;;  %v1312_v7 = vmul.f32 %v3062_v14, %v3062_v14  ;;  %v1297_v16 = vld [vmem:[#allocation3 + $0x20] sm:$0xff]  ;;  %v1283_v35 = vld [vmem:[#allocation2 + $0x30] sm:$0xff] }
 0x22f   : > { %v1302_v40 = vmul.f32 0.00048828125, %v1294_v17  ;;  %v1282_v21 = vld [vmem:[#allocation2 + $0x28] sm:$0xff]  ;;  %v3074_v3 = vmul.f32 0.00048828125, %v1281_v13  ;;  %v1305_v27 = vmul.f32 0.00048828125, %v1297_v16  ;;  %v3078_v47 = vmul.f32 0.00048828125, %v1284_v28  ;;  %v1299_v34 = vld [vmem:[#allocation3 + $0x30] sm:$0xff] }
 0x230   : > { %v1298_v22 = vld [vmem:[#allocation3 + $0x28] sm:$0xff]  ;;  %v1319_v29 = vsub.f32 %v1303_v8, %v1311_v12  ;;  %v3070_v32 = vmul.f32 0.00048828125, %v1282_v21  ;;  %v1317_v24 = vsub.f32 %v1301_v57, %v1309_v18  ;;  %v1310_v25 = vmul.f32 %v3066_v19, %v3066_v19  ;;  %v1327_v61 = vld [vmem:[%s3541_s2 + $0x10] sm:$0xff]  ;;  %v1325_v23 = vld [vmem:[%s3541_s2] sm:$0xff] }
 0x231   : > { %v1306_v6 = vmul.f32 0.00048828125, %v1298_v22  ;;  %v1300_v30 = vld [vmem:[#allocation3 + $0x38] sm:$0xff]  ;;  %v1320_v26 = vsub.f32 %v1304_v15, %v1312_v7  ;;  %v1313_v41 = vmul.f32 %v3074_v3, %v3074_v3  ;;  %v1316_v49 = vmul.f32 %v3078_v47, %v3078_v47  ;;  %v1326_v36 = vld [vmem:[%s3541_s2 + $0x8] sm:$0xff]  ;;  %v1329_v58 = vld [vmem:[%s3541_s2 + $0x20] sm:$0xff] }
 0x232   : > { %v1335_v33 = vadd.f32 0.001, %v1319_v29  ;;  %v1314_v43 = vmul.f32 %v3070_v32, %v3070_v32  ;;  %v1333_v20 = vadd.f32 0.001, %v1317_v24  ;;  %v1318_v48 = vsub.f32 %v1302_v40, %v1310_v25  ;;  %v1328_v63 = vld [vmem:[%s3541_s2 + $0x18] sm:$0xff]  ;;  %v1330_v57 = vld [vmem:[%s3541_s2 + $0x28] sm:$0xff] }
 0x233   : > { %v1308_v42 = vmul.f32 0.00048828125, %v1300_v30  ;;  %v1336_v45 = vadd.f32 0.001, %v1320_v26  ;;  %v1321_v31 = vsub.f32 %v1305_v27, %v1313_v41  ;;  %v3084_v51 = vmul.f32 0.00048828125, %v1283_v35  ;;  %v1332_v17 = vld [vmem:[%s3541_s2 + $0x38] sm:$0xff]  ;;  %v1331_v40 = vld [vmem:[%s3541_s2 + $0x30] sm:$0xff] }
 0x234   : > { %2194 = vrsqrt.f32 %v1335_v33  ;;  %v1322_v46 = vsub.f32 %v1306_v6, %v1314_v43  ;;  %v1334_v50 = vadd.f32 0.001, %v1318_v48  ;;  %v1307_v53 = vmul.f32 0.00048828125, %v1299_v34  ;;  %v1358_v6 = vld [vmem:[%s3542_s3 + $0x8] sm:$0xff]  ;;  %v1357_v13 = vld [vmem:[%s3542_s3] sm:$0xff]  ;;  %v1359_v27 = vld [vmem:[%s3542_s3 + $0x10] sm:$0xff] }
 0x235   : > { %2196 = vrsqrt.f32 %v1333_v20  ;;  %v1324_v52 = vsub.f32 %v1308_v42, %v1316_v49  ;;  %v1337_v54 = vadd.f32 0.001, %v1321_v31  ;;  %v1315_v39 = vmul.f32 %v3084_v51, %v3084_v51  ;;  %v1361_v26 = vld [vmem:[%s3542_s3 + $0x20] sm:$0xff]  ;;  %v1403_v31 = vld [vmem:[#allocation9 + $0xb0] sm:$0xff] }
 0x236   : > { %2198 = vrsqrt.f32 %v1336_v45  ;;  %v1338_v38 = vadd.f32 0.001, %v1322_v46  ;;  %v1397_v34 = vld [vmem:[#allocation9 + $0x80] sm:$0xff]  ;;  %v1399_v45 = vld [vmem:[#allocation9 + $0x90] sm:$0xff]  ;;  %v1400_v46 = vld [vmem:[#allocation9 + $0x98] sm:$0xff] }
 0x237   : > { %2200 = vrsqrt.f32 %v1334_v50  ;;  %v1340_v55 = vadd.f32 0.001, %v1324_v52  ;;  %v1323_v56 = vsub.f32 %v1307_v53, %v1315_v39  ;;  %v1401_v49 = vld [vmem:[#allocation9 + $0xa0] sm:$0xff]  ;;  %v1402_v50 = vld [vmem:[#allocation9 + $0xa8] sm:$0xff]  ;;  %v1463_v53 = vld [vmem:[#allocation9 + $0x290] sm:$0xff] }
 0x238   : > { %2202 = vrsqrt.f32 %v1338_v38  ;;  %v1404_v38 = vld [vmem:[#allocation9 + $0xb8] sm:$0xff]  ;;  %v1461_v52 = vld [vmem:[#allocation9 + $0x280] sm:$0xff] }
 0x239   : > { %2204 = vrsqrt.f32 %v1337_v54  ;;  %v1339_v59 = vadd.f32 0.001, %v1323_v56  ;;  %v1464_v54 = vld [vmem:[#allocation9 + $0x298] sm:$0xff]  ;;  %v1465_v39 = vld [vmem:[#allocation9 + $0x2a0] sm:$0xff]  ;;  %v1467_v56 = vld [vmem:[#allocation9 + $0x2b0] sm:$0xff] }
 0x23a   : > { %2206 = vrsqrt.f32 %v1340_v55  ;;  %v1466_v55 = vld [vmem:[#allocation9 + $0x2a8] sm:$0xff] }
 0x23b   : > { %2208 = vrsqrt.f32 %v1339_v59  ;;  %v1468_v59 = vld [vmem:[#allocation9 + $0x2b8] sm:$0xff] }
 0x241   : > { %v2195_v62 = vpop.eup %2194 }
 0x242   : > { %v2197_v60 = vpop.eup %2196  ;;  %v1351_v37 = vmul.f32 %v2195_v62, %v1327_v61  ;;  %v1382_v62 = vld [vmem:[#allocation9 + $0x8] sm:$0xff] }
 0x243   : > { %v2199_v1 = vpop.eup %2198  ;;  %v1349_v2 = vmul.f32 %v2197_v60, %v1325_v23  ;;  %v1381_v23 = vld [vmem:[#allocation9] sm:$0xff]  ;;  %v1384_v60 = vld [vmem:[#allocation9 + $0x18] sm:$0xff] }
 0x244   : > { %v2201_v4 = vpop.eup %2200  ;;  %1521 = vperm.xlu1 %2193, %v1351_v37   ;;  %v1352_v8 = vmul.f32 %v2199_v1, %v1328_v63  ;;  %v1367_v25 = vmul.f32 %v1351_v37, %v3056_v5  ;;  %v1362_v5 = vld [vmem:[%s3542_s3 + $0x28] sm:$0xff]  ;;  %v1383_v63 = vld [vmem:[#allocation9 + $0x10] sm:$0xff] }
 0x245   : > { %v2203_v9 = vpop.eup %2202  ;;  %1511 = vperm.xlu0 %2192, %v1349_v2   ;;  %v1350_v10 = vmul.f32 %v2201_v4, %v1326_v36  ;;  %v1365_v29 = vmul.f32 %v1349_v2, %v3058_v11  ;;  %v1360_v11 = vld [vmem:[%s3542_s3 + $0x18] sm:$0xff]  ;;  %v1385_v4 = vld [vmem:[#allocation9 + $0x20] sm:$0xff] }
 0x246   : > { %v2205_v0 = vpop.eup %2204  ;;  %v1354_v12 = vmul.f32 %v2203_v9, %v1330_v57  ;;  %v1368_v24 = vmul.f32 %v1352_v8, %v3062_v14  ;;  %v1375_v33 = vsub.f32 %v1359_v27, %v1367_v25  ;;  %v1387_v9 = vld [vmem:[#allocation9 + $0x30] sm:$0xff] }
 0x247   : > { %v2207_v15 = vpop.eup %2206  ;;  %v1353_v44 = vmul.f32 %v2205_v0, %v1329_v58  ;;  %v1366_v22 = vmul.f32 %v1350_v10, %v3066_v19  ;;  %v1373_v19 = vsub.f32 %v1357_v13, %v1365_v29  ;;  %v1450_v13 = vld [vmem:[#allocation9 + $0x228] sm:$0xff] }
 0x248   : > { %1526 = vperm.xlu1 %2193, %v1352_v8   ;;  %v2209_v18 = vpop.eup %2208  ;;  %v1356_v21 = vmul.f32 %v2207_v15, %v1332_v17  ;;  %v1376_v28 = vsub.f32 %v1360_v11, %v1368_v24  ;;  %v1370_v30 = vmul.f32 %v1354_v12, %v3070_v32  ;;  %v1364_v32 = vld [vmem:[%s3542_s3 + $0x38] sm:$0xff]  ;;  %v1386_v8 = vld [vmem:[#allocation9 + $0x28] sm:$0xff]  ;;  %v1445_v15 = vld [vmem:[#allocation9 + $0x200] sm:$0xff] }
 0x249   : > { %1516 = vperm.xlu0 %2192, %v1350_v10   ;;  %v1355_v7 = vmul.f32 %v2209_v18, %v1331_v40  ;;  %v1374_v16 = vsub.f32 %v1358_v6, %v1366_v22  ;;  %v1369_v14 = vmul.f32 %v1353_v44, %v3074_v3  ;;  %v1363_v3 = vld [vmem:[%s3542_s3 + $0x30] sm:$0xff]  ;;  %v1388_v10 = vld [vmem:[#allocation9 + $0x38] sm:$0xff]  ;;  %v1449_v6 = vld [vmem:[#allocation9 + $0x220] sm:$0xff] }
 0x24a   : > { %v1378_v43 = vsub.f32 %v1362_v5, %v1370_v30  ;;  %v1372_v35 = vmul.f32 %v1356_v21, %v3078_v47  ;;  %v1398_v47 = vld [vmem:[#allocation9 + $0x88] sm:$0xff]  ;;  %v1447_v17 = vld [vmem:[#allocation9 + $0x210] sm:$0xff]  ;;  %v1448_v18 = vld [vmem:[#allocation9 + $0x218] sm:$0xff] }
 0x24b   : > { %v1377_v20 = vsub.f32 %v1361_v26, %v1369_v14  ;;  %v1371_v48 = vmul.f32 %v1355_v7, %v3084_v51  ;;  %v1462_v51 = vld [vmem:[#allocation9 + $0x288] sm:$0xff]  ;;  %v1452_v24 = vld [vmem:[#allocation9 + $0x238] sm:$0xff] }
 0x24c   : > { %1536 = vperm.xlu1 %2193, %v1354_v12   ;;  %v1380_v41 = vsub.f32 %v1364_v32, %v1372_v35  ;;  %v1406_v30 = vld [vmem:[#allocation9 + $0xc8] sm:$0xff]  ;;  %v1408_v5 = vld [vmem:[#allocation9 + $0xd8] sm:$0xff]  ;;  %v1409_v32 = vld [vmem:[#allocation9 + $0xe0] sm:$0xff] }
 0x24d   : > { %1531 = vperm.xlu0 %2192, %v1353_v44   ;;  %v1379_v42 = vsub.f32 %v1363_v3, %v1371_v48  ;;  %v1446_v44 = vld [vmem:[#allocation9 + $0x208] sm:$0xff]  ;;  %v1411_v3 = vld [vmem:[#allocation9 + $0xf0] sm:$0xff] }
 0x24e   : > { %v1410_v48 = vld [vmem:[#allocation9 + $0xe8] sm:$0xff] }
 0x250   : > { %1546 = vperm.xlu1 %2193, %v1356_v21  }
 0x251   : > { %1541 = vperm.xlu0 %2192, %v1355_v7  }
 0x254   : > { %1684 = vperm.xlu1 %2193, %v1374_v16   ;;  %v1451_v16 = vld [vmem:[#allocation9 + $0x230] sm:$0xff] }
 0x255   : > { %1679 = vperm.xlu0 %2192, %v1373_v19  }
 0x258   : > { %1694 = vperm.xlu1 %2193, %v1376_v28   ;;  %v1405_v28 = vld [vmem:[#allocation9 + $0xc0] sm:$0xff] }
 0x259   : > { %1689 = vperm.xlu0 %2192, %v1375_v33   ;;  %v1407_v33 = vld [vmem:[#allocation9 + $0xd0] sm:$0xff] }
 0x25c   : > { %1704 = vperm.xlu1 %2193, %v1378_v43  }
 0x25d   : > { %1699 = vperm.xlu0 %2192, %v1377_v20  }
 0x260   : > { %1714 = vperm.xlu1 %2193, %v1380_v41   ;;  %v1412_v41 = vld [vmem:[#allocation9 + $0xf8] sm:$0xff] }
 0x261   : > { %1709 = vperm.xlu0 %2192, %v1379_v42  }
 0x2bf   : > { %v1522_v61 = vpop.permute.xlu1 %1521 }
 0x2c0   : > { %v3144_v37 = vmul.f32 %v1522_v61, %v1397_v34  ;;  %v3146_v36 = vmul.f32 %v1522_v61, %v1398_v47  ;;  %v3148_v1 = vmul.f32 %v1522_v61, %v1399_v45  ;;  %v3150_v2 = vmul.f32 %v1522_v61, %v1400_v46  ;;  %v1512_v40 = vpop.permute.xlu0 %1511  ;;  %v1469_v46 = vld [vmem:[#allocation9 + $0x2c0] sm:$0xff] }
 0x2c1   : > { %v3152_v57 = vmul.f32 %v1522_v61, %v1401_v49  ;;  %v3154_v0 = vmul.f32 %v1522_v61, %v1402_v50  ;;  %v3156_v58 = vmul.f32 %v1522_v61, %v1403_v31  ;;  %v3158_v12 = vmul.f32 %v1522_v61, %v1404_v38  ;;  %v1470_v49 = vld [vmem:[#allocation9 + $0x2c8] sm:$0xff]  ;;  %v1471_v50 = vld [vmem:[#allocation9 + $0x2d0] sm:$0xff]  ;;  %v1472_v31 = vld [vmem:[#allocation9 + $0x2d8] sm:$0xff] }
 0x2c2   : > { %3551 = vst [vmem:[#allocation13_spill] sm:$0xff] %v3144_v37  ;;  %3552 = vst [vmem:[#allocation14_spill] sm:$0xff] %v3146_v36  ;;  %v3160_v21 = vmul.f32 %v1522_v61, %v1461_v52  ;;  %v3162_v22 = vmul.f32 %v1522_v61, %v1462_v51  ;;  %v3164_v29 = vmul.f32 %v1522_v61, %v1463_v53  ;;  %v1426_v37 = vld [vmem:[#allocation9 + $0x168] sm:$0xff] }
 0x2c3   : > { %3553 = vst [vmem:[#allocation15_spill] sm:$0xff] %v3148_v1  ;;  %3554 = vst [vmem:[#allocation16_spill] sm:$0xff] %v3150_v2  ;;  %v3166_v7 = vmul.f32 %v1522_v61, %v1464_v54  ;;  %v3168_v25 = vmul.f32 %v1522_v61, %v1465_v39  ;;  %v3170_v19 = vmul.f32 %v1522_v61, %v1466_v55  ;;  %v1527_v14 = vpop.permute.xlu1 %1526  ;;  %v1473_v54 = vld [vmem:[#allocation9 + $0x2e0] sm:$0xff]  ;;  %v1474_v39 = vld [vmem:[#allocation9 + $0x2e8] sm:$0xff] }
 0x2c4   : > { %3555 = vst [vmem:[#allocation17_spill] sm:$0xff] %v3152_v57  ;;  %3556 = vst [vmem:[#allocation18_spill] sm:$0xff] %v3154_v0  ;;  %v3172_v11 = vmul.f32 %v1522_v61, %v1467_v56  ;;  %v3174_v27 = vmul.f32 %v1522_v61, %v1468_v59  ;;  %v3176_v26 = vmul.f32 %v1512_v40, %v1381_v23  ;;  %v1475_v55 = vld [vmem:[#allocation9 + $0x2f0] sm:$0xff]  ;;  %v1476_v56 = vld [vmem:[#allocation9 + $0x2f8] sm:$0xff] }
 0x2c5   : > { %3557 = vst [vmem:[#allocation19_spill] sm:$0xff] %v3156_v58  ;;  %3558 = vst [vmem:[#allocation20_spill] sm:$0xff] %v3158_v12  ;;  %v3178_v43 = vmul.f32 %v1512_v40, %v1382_v62  ;;  %v3180_v35 = vmul.f32 %v1512_v40, %v1383_v63  ;;  %v3182_v20 = vmul.f32 %v1512_v40, %v1384_v60  ;;  %v1389_v63 = vld [vmem:[#allocation9 + $0x40] sm:$0xff]  ;;  %v1390_v60 = vld [vmem:[#allocation9 + $0x48] sm:$0xff] }
 0x2c6   : > { %3559 = vst [vmem:[#allocation21_spill] sm:$0xff] %v3160_v21  ;;  %3560 = vst [vmem:[#allocation22_spill] sm:$0xff] %v3162_v22  ;;  %v3184_v42 = vmul.f32 %v1512_v40, %v1385_v4  ;;  %v3186_v34 = vmul.f32 %v1512_v40, %v1386_v8  ;;  %v3188_v47 = vmul.f32 %v1512_v40, %v1387_v9  ;;  %v1391_v4 = vld [vmem:[#allocation9 + $0x50] sm:$0xff]  ;;  %v1392_v8 = vld [vmem:[#allocation9 + $0x58] sm:$0xff]  ;;  %v1517_v9 = vpop.permute.xlu0 %1516 }
 0x2c7   : > { %3561 = vst [vmem:[#allocation23_spill] sm:$0xff] %v3164_v29  ;;  %3562 = vst [vmem:[#allocation24_spill] sm:$0xff] %v3166_v7  ;;  %v3190_v45 = vmul.f32 %v1512_v40, %v1388_v10  ;;  %v3192_v38 = vmul.f32 %v1512_v40, %v1445_v15  ;;  %v3194_v52 = vmul.f32 %v1512_v40, %v1446_v44  ;;  %v1458_v22 = vld [vmem:[#allocation9 + $0x268] sm:$0xff]  ;;  %v1460_v21 = vld [vmem:[#allocation9 + $0x278] sm:$0xff] }
 0x2c8   : > { %3563 = vst [vmem:[#allocation25_spill] sm:$0xff] %v3168_v25  ;;  %3564 = vst [vmem:[#allocation26_spill] sm:$0xff] %v3170_v19  ;;  %v3196_v51 = vmul.f32 %v1512_v40, %v1447_v17  ;;  %v3198_v53 = vmul.f32 %v1512_v40, %v1448_v18  ;;  %v3200_v59 = vmul.f32 %v1512_v40, %v1449_v6  ;;  %v1393_v18 = vld [vmem:[#allocation9 + $0x60] sm:$0xff]  ;;  %v1394_v6 = vld [vmem:[#allocation9 + $0x68] sm:$0xff] }
 0x2c9   : > { %3565 = vst [vmem:[#allocation27_spill] sm:$0xff] %v3172_v11  ;;  %3566 = vst [vmem:[#allocation28_spill] sm:$0xff] %v3174_v27  ;;  %v3202_v61 = vmul.f32 %v1512_v40, %v1450_v13  ;;  %v3204_v23 = vmul.f32 %v1512_v40, %v1451_v16  ;;  %v3206_v62 = vmul.f32 %v1512_v40, %v1452_v24  ;;  %v1395_v13 = vld [vmem:[#allocation9 + $0x70] sm:$0xff]  ;;  %v1396_v16 = vld [vmem:[#allocation9 + $0x78] sm:$0xff] }
 0x2ca   : > { %v3208_v10 = vmul.f32 %v1527_v14, %v1405_v28  ;;  %v3210_v15 = vmul.f32 %v1527_v14, %v1406_v30  ;;  %v3212_v44 = vmul.f32 %v1527_v14, %v1407_v33  ;;  %v3214_v17 = vmul.f32 %v1527_v14, %v1408_v5  ;;  %v1453_v28 = vld [vmem:[#allocation9 + $0x240] sm:$0xff]  ;;  %v1454_v19 = vld [vmem:[#allocation9 + $0x248] sm:$0xff]  ;;  %v1455_v30 = vld [vmem:[#allocation9 + $0x250] sm:$0xff]  ;;  %v3224_v33 = vpop.permute.xlu1 %1536 }
 0x2cb   : > { %v3216_v27 = vmul.f32 %v1527_v14, %v1409_v32  ;;  %v3218_v40 = vmul.f32 %v1527_v14, %v1410_v48  ;;  %v3220_v24 = vmul.f32 %v1527_v14, %v1411_v3  ;;  %v3222_v11 = vmul.f32 %v1527_v14, %v1412_v41  ;;  %v1456_v25 = vld [vmem:[#allocation9 + $0x258] sm:$0xff]  ;;  %v1457_v48 = vld [vmem:[#allocation9 + $0x260] sm:$0xff]  ;;  %v1459_v3 = vld [vmem:[#allocation9 + $0x270] sm:$0xff] }
 0x2cc   : > { %v3226_v5 = vmul.f32 %v1527_v14, %v1469_v46  ;;  %v3228_v7 = vmul.f32 %v1527_v14, %v1470_v49  ;;  %v3230_v29 = vmul.f32 %v1527_v14, %v1471_v50  ;;  %v3232_v32 = vmul.f32 %v1527_v14, %v1472_v31  ;;  %v1421_v46 = vld [vmem:[#allocation9 + $0x140] sm:$0xff]  ;;  %v1422_v57 = vld [vmem:[#allocation9 + $0x148] sm:$0xff]  ;;  %v1423_v49 = vld [vmem:[#allocation9 + $0x150] sm:$0xff] }
 0x2cd   : > { %3567 = vst [vmem:[#allocation29_spill] sm:$0xff] %v3216_v27  ;;  %3568 = vst [vmem:[#allocation30_spill] sm:$0xff] %v3218_v40  ;;  %v3234_v41 = vmul.f32 %v1527_v14, %v1473_v54  ;;  %v3236_v12 = vmul.f32 %v1527_v14, %v1474_v39  ;;  %v3238_v58 = vmul.f32 %v1527_v14, %v1475_v55  ;;  %v1424_v2 = vld [vmem:[#allocation9 + $0x158] sm:$0xff]  ;;  %v1425_v54 = vld [vmem:[#allocation9 + $0x160] sm:$0xff] }
 0x2ce   : > { %3569 = vst [vmem:[#allocation31_spill] sm:$0xff] %v3220_v24  ;;  %3570 = vst [vmem:[#allocation32_spill] sm:$0xff] %v3222_v11  ;;  %v3240_v0 = vmul.f32 %v1527_v14, %v1476_v56  ;;  %v3242_v50 = vmul.f32 %v1517_v9, %v1389_v63  ;;  %v3244_v31 = vmul.f32 %v1517_v9, %v1390_v60  ;;  %v1427_v39 = vld [vmem:[#allocation9 + $0x170] sm:$0xff]  ;;  %v1485_v63 = vld [vmem:[#allocation9 + $0x340] sm:$0xff] }
 0x2cf   : > { %3571 = vst [vmem:[#allocation33_spill] sm:$0xff] %v3226_v5  ;;  %3572 = vst [vmem:[#allocation34_spill] sm:$0xff] %v3228_v7  ;;  %v3246_v1 = vmul.f32 %v1517_v9, %v1391_v4  ;;  %v3248_v36 = vmul.f32 %v1517_v9, %v1392_v8  ;;  %v3250_v55 = vmul.f32 %v1517_v9, %v1393_v18  ;;  %v1487_v60 = vld [vmem:[#allocation9 + $0x350] sm:$0xff]  ;;  %v1488_v18 = vld [vmem:[#allocation9 + $0x358] sm:$0xff] }
 0x2d0   : > { %3573 = vst [vmem:[#allocation35_spill] sm:$0xff] %v3230_v29  ;;  %3574 = vst [vmem:[#allocation36_spill] sm:$0xff] %v3232_v32  ;;  %v3252_v14 = vmul.f32 %v1517_v9, %v1394_v6  ;;  %v3254_v56 = vmul.f32 %v1517_v9, %v1395_v13  ;;  %v3260_v4 = vmul.f32 %v1517_v9, %v1453_v28  ;;  %v1489_v6 = vld [vmem:[#allocation9 + $0x360] sm:$0xff]  ;;  %v1490_v7 = vld [vmem:[#allocation9 + $0x368] sm:$0xff] }
 0x2d1   : > { %3575 = vst [vmem:[#allocation37_spill] sm:$0xff] %v3234_v41  ;;  %3576 = vst [vmem:[#allocation38_spill] sm:$0xff] %v3236_v12  ;;  %v1428_v12 = vld [vmem:[#allocation9 + $0x178] sm:$0xff]  ;;  %v3258_v41 = vpop.permute.xlu0 %1531  ;;  %v3262_v8 = vmul.f32 %v1517_v9, %v1454_v19  ;;  %v3264_v32 = vmul.f32 %v1517_v9, %v1455_v30  ;;  %v3266_v29 = vmul.f32 %v1517_v9, %v1456_v25  ;;  %v1491_v24 = vld [vmem:[#allocation9 + $0x370] sm:$0xff]  ;;  %v3276_v19 = vpop.permute.xlu1 %1546 }
 0x2d2   : > { %3577 = vst [vmem:[#allocation39_spill] sm:$0xff] %v3238_v58  ;;  %3578 = vst [vmem:[#allocation40_spill] sm:$0xff] %v3240_v0  ;;  %v3256_v0 = vmul.f32 %v1517_v9, %v1396_v16  ;;  %v1486_v58 = vld [vmem:[#allocation9 + $0x348] sm:$0xff]  ;;  %v3268_v13 = vmul.f32 %v1517_v9, %v1457_v48  ;;  %v3270_v16 = vmul.f32 %v1517_v9, %v1458_v22  ;;  %v1492_v28 = vld [vmem:[#allocation9 + $0x378] sm:$0xff] }
 0x2d3   : > { %v3272_v5 = vmul.f32 %v1517_v9, %v1459_v3  ;;  %v3274_v11 = vmul.f32 %v1517_v9, %v1460_v21  ;;  %v1413_v40 = vld [vmem:[#allocation9 + $0x100] sm:$0xff]  ;;  %3579 = vst [vmem:[#allocation41_spill] sm:$0xff] %v3276_v19  ;;  %v3279_v30 = vmul.f32 %v3224_v33, %v1421_v46  ;;  %v3282_v25 = vmul.f32 %v3224_v33, %v1422_v57  ;;  %v1414_v3 = vld [vmem:[#allocation9 + $0x108] sm:$0xff]  ;;  %v1415_v21 = vld [vmem:[#allocation9 + $0x110] sm:$0xff] }
 0x2d4   : > { %v3285_v48 = vmul.f32 %v3224_v33, %v1423_v49  ;;  %v3288_v22 = vmul.f32 %v3224_v33, %v1424_v2  ;;  %v1416_v9 = vld [vmem:[#allocation9 + $0x118] sm:$0xff]  ;;  %v3291_v27 = vmul.f32 %v3224_v33, %v1425_v54  ;;  %v3294_v19 = vmul.f32 %v3224_v33, %v1426_v37  ;;  %v1417_v49 = vld [vmem:[#allocation9 + $0x120] sm:$0xff] }
 0x2d5   : > { %3580 = vst [vmem:[#allocation42_spill] sm:$0xff] %v3282_v25  ;;  %v3297_v46 = vmul.f32 %v3224_v33, %v1427_v39  ;;  %v3300_v57 = vmul.f32 %v3224_v33, %v1428_v12  ;;  %v1419_v25 = vld [vmem:[#allocation9 + $0x130] sm:$0xff]  ;;  %v3303_v2 = vmul.f32 %v3224_v33, %v1485_v63  ;;  %v3309_v54 = vmul.f32 %v3224_v33, %v1487_v60  ;;  %v1420_v39 = vld [vmem:[#allocation9 + $0x138] sm:$0xff] }
 0x2d6   : > { %3581 = vst [vmem:[#allocation43_spill] sm:$0xff] %v3285_v48  ;;  %3582 = vst [vmem:[#allocation44_spill] sm:$0xff] %v3288_v22  ;;  %v1418_v48 = vld [vmem:[#allocation9 + $0x128] sm:$0xff]  ;;  %v3306_v22 = vmul.f32 %v3224_v33, %v1486_v58  ;;  %v3312_v37 = vmul.f32 %v3224_v33, %v1488_v18  ;;  %v3315_v12 = vmul.f32 %v3224_v33, %v1489_v6  ;;  %v1479_v60 = vld [vmem:[#allocation9 + $0x310] sm:$0xff]  ;;  %v3326_v18 = vpop.permute.xlu0 %1541 }
 0x2d7   : > { %3583 = vst [vmem:[#allocation45_spill] sm:$0xff] %v3291_v27  ;;  %3584 = vst [vmem:[#allocation46_spill] sm:$0xff] %v3294_v19  ;;  %v1478_v19 = vld [vmem:[#allocation9 + $0x308] sm:$0xff]  ;;  %v3321_v63 = vmul.f32 %v3224_v33, %v1491_v24  ;;  %v3324_v58 = vmul.f32 %v3224_v33, %v1492_v28  ;;  %v1484_v27 = vld [vmem:[#allocation9 + $0x338] sm:$0xff]  ;;  %v3329_v6 = vmul.f32 %v3258_v41, %v1413_v40 }
 0x2d8   : > { %3585 = vst [vmem:[#allocation47_spill] sm:$0xff] %v3297_v46  ;;  %3586 = vst [vmem:[#allocation48_spill] sm:$0xff] %v3300_v57  ;;  %v1477_v46 = vld [vmem:[#allocation9 + $0x300] sm:$0xff]  ;;  %v3318_v57 = vmul.f32 %v3224_v33, %v1490_v7  ;;  %v3332_v7 = vmul.f32 %v3258_v41, %v1414_v3  ;;  %v3335_v24 = vmul.f32 %v3258_v41, %v1415_v21  ;;  %v1685_v3 = vpop.permute.xlu1 %1684 }
 0x2d9   : > { %3587 = vst [vmem:[#allocation49_spill] sm:$0xff] %v3303_v2  ;;  %3588 = vst [vmem:[#allocation50_spill] sm:$0xff] %v3306_v22  ;;  %v1481_v22 = vld [vmem:[#allocation9 + $0x320] sm:$0xff]  ;;  %v1483_v2 = vld [vmem:[#allocation9 + $0x330] sm:$0xff]  ;;  %v3338_v33 = vmul.f32 %v3258_v41, %v1416_v9  ;;  %v3341_v28 = vmul.f32 %v3258_v41, %v1417_v49  ;;  %v3350_v40 = vmul.f32 %v3258_v41, %v1420_v39 }
 0x2da   : > { %3589 = vst [vmem:[#allocation51_spill] sm:$0xff] %v3309_v54  ;;  %3590 = vst [vmem:[#allocation52_spill] sm:$0xff] %v3312_v37  ;;  %v1480_v54 = vld [vmem:[#allocation9 + $0x318] sm:$0xff]  ;;  %v1482_v37 = vld [vmem:[#allocation9 + $0x328] sm:$0xff]  ;;  %v3356_v21 = vmul.f32 %v3258_v41, %v1478_v19  ;;  %v3359_v9 = vmul.f32 %v3258_v41, %v1479_v60  ;;  %v3371_v39 = vmul.f32 %v3258_v41, %v1483_v2 }
 0x2db   : > { %3591 = vst [vmem:[#allocation53_spill] sm:$0xff] %v3324_v58  ;;  %3592 = vst [vmem:[#allocation54_spill] sm:$0xff] %v3326_v18  ;;  %v3344_v18 = vmul.f32 %v3258_v41, %v1418_v48  ;;  %v3347_v58 = vmul.f32 %v3258_v41, %v1419_v25  ;;  %v3362_v49 = vmul.f32 %v3258_v41, %v1480_v54 }
 0x2dc   : > { %3593 = vst [vmem:[#allocation55_spill] sm:$0xff] %v3332_v7  ;;  %v3353_v7 = vmul.f32 %v3258_v41, %v1477_v46  ;;  %3594 = vst [vmem:[#allocation56_spill] sm:$0xff] %v3359_v9  ;;  %v3365_v48 = vmul.f32 %v3258_v41, %v1481_v22  ;;  %v3368_v25 = vmul.f32 %v3258_v41, %v1482_v37 }
 0x2dd   : > { %3596 = vst [vmem:[#allocation58_spill] sm:$0xff] %v3371_v39  ;;  %v3374_v46 = vmul.f32 %v3258_v41, %v1484_v27  ;;  %v1725_v19 = vadd.f32 %v1685_v3, %v3242_v50  ;;  %v1726_v60 = vadd.f32 %v1685_v3, %v3244_v31  ;;  %v1727_v9 = vadd.f32 %v1685_v3, %v3246_v1  ;;  %v1680_v39 = vpop.permute.xlu0 %1679 }
 0x2de   : > { %3595 = vst [vmem:[#allocation57_spill] sm:$0xff] %v3365_v48  ;;  %v1728_v54 = vadd.f32 %v1685_v3, %v3248_v36  ;;  %v1729_v22 = vadd.f32 %v1685_v3, %v3250_v55  ;;  %v1730_v48 = vadd.f32 %v1685_v3, %v3252_v14  ;;  %v1731_v37 = vadd.f32 %v1685_v3, %v3254_v56 }
 0x2df   : > { %v1732_v2 = vadd.f32 %v1685_v3, %v3256_v0  ;;  %v1789_v27 = vadd.f32 %v1685_v3, %v3260_v4  ;;  %v1790_v41 = vadd.f32 %v1685_v3, %v3262_v8  ;;  %v1791_v50 = vadd.f32 %v1685_v3, %v3264_v32  ;;  %1853 = vst [vmem:[#allocation9 + $0x40] sm:$0xff] %v1725_v19 }
 0x2e0   : > { %v1792_v31 = vadd.f32 %v1685_v3, %v3266_v29  ;;  %1854 = vst [vmem:[#allocation9 + $0x48] sm:$0xff] %v1726_v60  ;;  %1855 = vst [vmem:[#allocation9 + $0x50] sm:$0xff] %v1727_v9  ;;  %v1793_v36 = vadd.f32 %v1685_v3, %v3268_v13  ;;  %v1794_v1 = vadd.f32 %v1685_v3, %v3270_v16  ;;  %v1695_v13 = vpop.permute.xlu1 %1694  ;;  %v3599_v16 = vld [vmem:[#allocation31_spill] sm:$0xff]  ;;  %v3600_v9 = vld [vmem:[#allocation32_spill] sm:$0xff] }
 0x2e1   : > { %1856 = vst [vmem:[#allocation9 + $0x58] sm:$0xff] %v1728_v54  ;;  %v1795_v55 = vadd.f32 %v1685_v3, %v3272_v5  ;;  %v1796_v0 = vadd.f32 %v1685_v3, %v3274_v11  ;;  %1857 = vst [vmem:[#allocation9 + $0x60] sm:$0xff] %v1729_v22  ;;  %v1717_v29 = vadd.f32 %v1680_v39, %v3176_v26 }
 0x2e2   : > { %1858 = vst [vmem:[#allocation9 + $0x68] sm:$0xff] %v1730_v48  ;;  %1859 = vst [vmem:[#allocation9 + $0x70] sm:$0xff] %v1731_v37  ;;  %v1718_v32 = vadd.f32 %v1680_v39, %v3178_v43  ;;  %v1719_v14 = vadd.f32 %v1680_v39, %v3180_v35  ;;  %v1720_v56 = vadd.f32 %v1680_v39, %v3182_v20  ;;  %v3605_v37 = vld [vmem:[#allocation37_spill] sm:$0xff] }
 0x2e3   : > { %1860 = vst [vmem:[#allocation9 + $0x78] sm:$0xff] %v1732_v2  ;;  %1917 = vst [vmem:[#allocation9 + $0x240] sm:$0xff] %v1789_v27  ;;  %v1721_v11 = vadd.f32 %v1680_v39, %v3184_v42  ;;  %v1722_v5 = vadd.f32 %v1680_v39, %v3186_v34  ;;  %v1723_v4 = vadd.f32 %v1680_v39, %v3188_v47  ;;  %v3606_v27 = vld [vmem:[#allocation38_spill] sm:$0xff] }
 0x2e4   : > { %1918 = vst [vmem:[#allocation9 + $0x248] sm:$0xff] %v1790_v41  ;;  %1919 = vst [vmem:[#allocation9 + $0x250] sm:$0xff] %v1791_v50  ;;  %v1724_v8 = vadd.f32 %v1680_v39, %v3190_v45  ;;  %v1781_v26 = vadd.f32 %v1680_v39, %v3192_v38  ;;  %v1782_v43 = vadd.f32 %v1680_v39, %v3194_v52  ;;  %v3607_v50 = vld [vmem:[#allocation39_spill] sm:$0xff] }
 0x2e5   : > { %1920 = vst [vmem:[#allocation9 + $0x258] sm:$0xff] %v1792_v31  ;;  %1921 = vst [vmem:[#allocation9 + $0x260] sm:$0xff] %v1793_v36  ;;  %v1783_v35 = vadd.f32 %v1680_v39, %v3196_v51  ;;  %v1784_v20 = vadd.f32 %v1680_v39, %v3198_v53  ;;  %v1785_v42 = vadd.f32 %v1680_v39, %v3200_v59  ;;  %v3597_v59 = vld [vmem:[#allocation29_spill] sm:$0xff]  ;;  %v3608_v36 = vld [vmem:[#allocation40_spill] sm:$0xff] }
 0x2e6   : > { %1922 = vst [vmem:[#allocation9 + $0x268] sm:$0xff] %v1794_v1  ;;  %1923 = vst [vmem:[#allocation9 + $0x270] sm:$0xff] %v1795_v55  ;;  %v1786_v34 = vadd.f32 %v1680_v39, %v3202_v61  ;;  %v1787_v47 = vadd.f32 %v1680_v39, %v3204_v23  ;;  %v1788_v45 = vadd.f32 %v1680_v39, %v3206_v62  ;;  %v3598_v23 = vld [vmem:[#allocation30_spill] sm:$0xff]  ;;  %v1690_v39 = vpop.permute.xlu0 %1689  ;;  %v3609_v55 = vld [vmem:[#allocation13_spill] sm:$0xff] }
 0x2e7   : > { %1924 = vst [vmem:[#allocation9 + $0x278] sm:$0xff] %v1796_v0  ;;  %1845 = vst [vmem:[#allocation9] sm:$0xff] %v1717_v29  ;;  %v1741_v38 = vadd.f32 %v1695_v13, %v3208_v10  ;;  %v1742_v52 = vadd.f32 %v1695_v13, %v3210_v15  ;;  %v1743_v51 = vadd.f32 %v1695_v13, %v3212_v44  ;;  %v3601_v10 = vld [vmem:[#allocation33_spill] sm:$0xff]  ;;  %v3602_v15 = vld [vmem:[#allocation34_spill] sm:$0xff] }
 0x2e8   : > { %1846 = vst [vmem:[#allocation9 + $0x8] sm:$0xff] %v1718_v32  ;;  %1847 = vst [vmem:[#allocation9 + $0x10] sm:$0xff] %v1719_v14  ;;  %v1744_v53 = vadd.f32 %v1695_v13, %v3214_v17  ;;  %v1745_v61 = vadd.f32 %v1695_v13, %v3597_v59  ;;  %v1746_v62 = vadd.f32 %v1695_v13, %v3598_v23  ;;  %v3603_v44 = vld [vmem:[#allocation35_spill] sm:$0xff]  ;;  %v3604_v17 = vld [vmem:[#allocation36_spill] sm:$0xff] }
 0x2e9   : > { %1848 = vst [vmem:[#allocation9 + $0x18] sm:$0xff] %v1720_v56  ;;  %1849 = vst [vmem:[#allocation9 + $0x20] sm:$0xff] %v1721_v11  ;;  %v1747_v3 = vadd.f32 %v1695_v13, %v3599_v16  ;;  %v1748_v48 = vadd.f32 %v1695_v13, %v3600_v9  ;;  %v1805_v19 = vadd.f32 %v1695_v13, %v3601_v10  ;;  %v3610_v29 = vld [vmem:[#allocation14_spill] sm:$0xff]  ;;  %v3611_v14 = vld [vmem:[#allocation15_spill] sm:$0xff] }
 0x2ea   : > { %1850 = vst [vmem:[#allocation9 + $0x28] sm:$0xff] %v1722_v5  ;;  %1851 = vst [vmem:[#allocation9 + $0x30] sm:$0xff] %v1723_v4  ;;  %v1806_v60 = vadd.f32 %v1695_v13, %v3602_v15  ;;  %v1807_v54 = vadd.f32 %v1695_v13, %v3603_v44  ;;  %v1808_v22 = vadd.f32 %v1695_v13, %v3604_v17  ;;  %v3612_v11 = vld [vmem:[#allocation16_spill] sm:$0xff]  ;;  %v3613_v4 = vld [vmem:[#allocation17_spill] sm:$0xff] }
 0x2eb   : > { %1852 = vst [vmem:[#allocation9 + $0x38] sm:$0xff] %v1724_v8  ;;  %1909 = vst [vmem:[#allocation9 + $0x200] sm:$0xff] %v1781_v26  ;;  %v1809_v2 = vadd.f32 %v1695_v13, %v3605_v37  ;;  %v1810_v41 = vadd.f32 %v1695_v13, %v3606_v27  ;;  %v1811_v31 = vadd.f32 %v1695_v13, %v3607_v50  ;;  %v3620_v59 = vld [vmem:[#allocation24_spill] sm:$0xff]  ;;  %v3621_v23 = vld [vmem:[#allocation25_spill] sm:$0xff] }
 0x2ec   : > { %1910 = vst [vmem:[#allocation9 + $0x208] sm:$0xff] %v1782_v43  ;;  %1911 = vst [vmem:[#allocation9 + $0x210] sm:$0xff] %v1783_v35  ;;  %v1812_v1 = vadd.f32 %v1695_v13, %v3608_v36  ;;  %v1733_v0 = vadd.f32 %v1690_v39, %v3609_v55  ;;  %v1734_v32 = vadd.f32 %v1690_v39, %v3610_v29  ;;  %v3614_v13 = vld [vmem:[#allocation18_spill] sm:$0xff]  ;;  %v3615_v43 = vld [vmem:[#allocation19_spill] sm:$0xff]  ;;  %v1700_v55 = vpop.permute.xlu0 %1699 }
 0x2ed   : > { %1912 = vst [vmem:[#allocation9 + $0x218] sm:$0xff] %v1784_v20  ;;  %1913 = vst [vmem:[#allocation9 + $0x220] sm:$0xff] %v1785_v42  ;;  %v1735_v56 = vadd.f32 %v1690_v39, %v3611_v14  ;;  %v1736_v5 = vadd.f32 %v1690_v39, %v3612_v11  ;;  %v1737_v8 = vadd.f32 %v1690_v39, %v3613_v4  ;;  %v3616_v20 = vld [vmem:[#allocation20_spill] sm:$0xff]  ;;  %v3622_v16 = vld [vmem:[#allocation26_spill] sm:$0xff] }
 0x2ee   : > { %1914 = vst [vmem:[#allocation9 + $0x228] sm:$0xff] %v1786_v34  ;;  %1915 = vst [vmem:[#allocation9 + $0x230] sm:$0xff] %v1787_v47  ;;  %v1738_v26 = vadd.f32 %v1690_v39, %v3614_v13  ;;  %v1739_v35 = vadd.f32 %v1690_v39, %v3615_v43  ;;  %v1740_v42 = vadd.f32 %v1690_v39, %v3616_v20  ;;  %v1705_v34 = vpop.permute.xlu1 %1704  ;;  %v3617_v47 = vld [vmem:[#allocation21_spill] sm:$0xff]  ;;  %v3623_v9 = vld [vmem:[#allocation27_spill] sm:$0xff] }
 0x2ef   : > { %1916 = vst [vmem:[#allocation9 + $0x238] sm:$0xff] %v1788_v45  ;;  %1869 = vst [vmem:[#allocation9 + $0xc0] sm:$0xff] %v1741_v38  ;;  %v1797_v45 = vadd.f32 %v1690_v39, %v3617_v47  ;;  %v3618_v38 = vld [vmem:[#allocation22_spill] sm:$0xff]  ;;  %v3624_v10 = vld [vmem:[#allocation28_spill] sm:$0xff]  ;;  %v1757_v15 = vadd.f32 %v1705_v34, %v3279_v30  ;;  %v1825_v4 = vadd.f32 %v1705_v34, %v3315_v12 }
 0x2f0   : > { %1870 = vst [vmem:[#allocation9 + $0xc8] sm:$0xff] %v1742_v52  ;;  %1871 = vst [vmem:[#allocation9 + $0xd0] sm:$0xff] %v1743_v51  ;;  %v1798_v52 = vadd.f32 %v1690_v39, %v3618_v38  ;;  %v3619_v51 = vld [vmem:[#allocation23_spill] sm:$0xff]  ;;  %v3629_v27 = vld [vmem:[#allocation46_spill] sm:$0xff]  ;;  %v1827_v13 = vadd.f32 %v1705_v34, %v3321_v63  ;;  %v1749_v20 = vadd.f32 %v1700_v55, %v3329_v6 }
 0x2f1   : > { %1872 = vst [vmem:[#allocation9 + $0xd8] sm:$0xff] %v1744_v53  ;;  %1873 = vst [vmem:[#allocation9 + $0xe0] sm:$0xff] %v1745_v61  ;;  %v1799_v53 = vadd.f32 %v1690_v39, %v3619_v51  ;;  %v1800_v61 = vadd.f32 %v1690_v39, %v3620_v59  ;;  %v3630_v50 = vld [vmem:[#allocation47_spill] sm:$0xff]  ;;  %v3631_v36 = vld [vmem:[#allocation48_spill] sm:$0xff]  ;;  %v1751_v12 = vadd.f32 %v1700_v55, %v3335_v24 }
 0x2f2   : > { %1874 = vst [vmem:[#allocation9 + $0xe8] sm:$0xff] %v1746_v62  ;;  %1875 = vst [vmem:[#allocation9 + $0xf0] sm:$0xff] %v1747_v3  ;;  %v1801_v62 = vadd.f32 %v1690_v39, %v3621_v23  ;;  %v1802_v3 = vadd.f32 %v1690_v39, %v3622_v16  ;;  %v3632_v30 = vld [vmem:[#allocation49_spill] sm:$0xff]  ;;  %v3633_v29 = vld [vmem:[#allocation50_spill] sm:$0xff]  ;;  %v1753_v38 = vadd.f32 %v1700_v55, %v3341_v28 }
 0x2f3   : > { %1876 = vst [vmem:[#allocation9 + $0xf8] sm:$0xff] %v1748_v48  ;;  %1933 = vst [vmem:[#allocation9 + $0x2c0] sm:$0xff] %v1805_v19  ;;  %v1803_v48 = vadd.f32 %v1690_v39, %v3623_v9  ;;  %v1804_v19 = vadd.f32 %v1690_v39, %v3624_v10  ;;  %v3628_v39 = vld [vmem:[#allocation45_spill] sm:$0xff]  ;;  %v3634_v14 = vld [vmem:[#allocation51_spill] sm:$0xff]  ;;  %v1755_v51 = vadd.f32 %v1700_v55, %v3347_v58 }
 0x2f4   : > { %1934 = vst [vmem:[#allocation9 + $0x2c8] sm:$0xff] %v1806_v60  ;;  %1935 = vst [vmem:[#allocation9 + $0x2d0] sm:$0xff] %v1807_v54  ;;  %v3625_v60 = vld [vmem:[#allocation42_spill] sm:$0xff]  ;;  %v3626_v54 = vld [vmem:[#allocation43_spill] sm:$0xff]  ;;  %v1756_v6 = vadd.f32 %v1700_v55, %v3350_v40  ;;  %v1816_v16 = vadd.f32 %v1700_v55, %v3362_v49  ;;  %v1818_v9 = vadd.f32 %v1700_v55, %v3368_v25 }
 0x2f5   : > { %1936 = vst [vmem:[#allocation9 + $0x2d8] sm:$0xff] %v1808_v22  ;;  %1937 = vst [vmem:[#allocation9 + $0x2e0] sm:$0xff] %v1809_v2  ;;  %v1758_v44 = vadd.f32 %v1705_v34, %v3625_v60  ;;  %v1759_v17 = vadd.f32 %v1705_v34, %v3626_v54  ;;  %v3627_v22 = vld [vmem:[#allocation44_spill] sm:$0xff]  ;;  %v1761_v2 = vadd.f32 %v1705_v34, %v3628_v39  ;;  %v1438_v63 = vld [vmem:[#allocation9 + $0x1c8] sm:$0xff] }
 0x2f6   : > { %1938 = vst [vmem:[#allocation9 + $0x2e8] sm:$0xff] %v1810_v41  ;;  %1939 = vst [vmem:[#allocation9 + $0x2f0] sm:$0xff] %v1811_v31  ;;  %v1760_v37 = vadd.f32 %v1705_v34, %v3627_v22  ;;  %v1762_v41 = vadd.f32 %v1705_v34, %v3629_v27  ;;  %v1763_v31 = vadd.f32 %v1705_v34, %v3630_v50  ;;  %v3635_v11 = vld [vmem:[#allocation52_spill] sm:$0xff]  ;;  %v1442_v59 = vld [vmem:[#allocation9 + $0x1e8] sm:$0xff] }
 0x2f7   : > { %1940 = vst [vmem:[#allocation9 + $0x2f8] sm:$0xff] %v1812_v1  ;;  %1861 = vst [vmem:[#allocation9 + $0x80] sm:$0xff] %v1733_v0  ;;  %v1764_v1 = vadd.f32 %v1705_v34, %v3631_v36  ;;  %v1821_v0 = vadd.f32 %v1705_v34, %v3632_v30  ;;  %v1443_v24 = vld [vmem:[#allocation9 + $0x1f0] sm:$0xff]  ;;  %v3638_v23 = vld [vmem:[#allocation56_spill] sm:$0xff] }
 0x2f8   : > { %1862 = vst [vmem:[#allocation9 + $0x88] sm:$0xff] %v1734_v32  ;;  %1863 = vst [vmem:[#allocation9 + $0x90] sm:$0xff] %v1735_v56  ;;  %v1822_v32 = vadd.f32 %v1705_v34, %v3633_v29  ;;  %v1823_v56 = vadd.f32 %v1705_v34, %v3634_v14  ;;  %v1501_v28 = vld [vmem:[#allocation9 + $0x3c0] sm:$0xff]  ;;  %v1502_v58 = vld [vmem:[#allocation9 + $0x3c8] sm:$0xff] }
 0x2f9   : > { %1864 = vst [vmem:[#allocation9 + $0x98] sm:$0xff] %v1736_v5  ;;  %1865 = vst [vmem:[#allocation9 + $0xa0] sm:$0xff] %v1737_v8  ;;  %v1824_v5 = vadd.f32 %v1705_v34, %v3635_v11  ;;  %v1826_v8 = vadd.f32 %v1705_v34, %v3318_v57  ;;  %v1752_v57 = vadd.f32 %v1700_v55, %v3338_v33  ;;  %v1504_v49 = vld [vmem:[#allocation9 + $0x3d8] sm:$0xff]  ;;  %v1507_v60 = vld [vmem:[#allocation9 + $0x3f0] sm:$0xff] }
 0x2fa   : > { %1866 = vst [vmem:[#allocation9 + $0xa8] sm:$0xff] %v1738_v26  ;;  %1867 = vst [vmem:[#allocation9 + $0xb0] sm:$0xff] %v1739_v35  ;;  %v3636_v26 = vld [vmem:[#allocation53_spill] sm:$0xff]  ;;  %v1813_v33 = vadd.f32 %v1700_v55, %v3353_v7  ;;  %v1820_v7 = vadd.f32 %v1700_v55, %v3374_v46 }
 0x2fb   : > { %1868 = vst [vmem:[#allocation9 + $0xb8] sm:$0xff] %v1740_v42  ;;  %1925 = vst [vmem:[#allocation9 + $0x280] sm:$0xff] %v1797_v45  ;;  %v1828_v43 = vadd.f32 %v1705_v34, %v3636_v26  ;;  %v1437_v35 = vld [vmem:[#allocation9 + $0x1c0] sm:$0xff]  ;;  %v3637_v42 = vld [vmem:[#allocation55_spill] sm:$0xff] }
 0x2fc   : > { %1926 = vst [vmem:[#allocation9 + $0x288] sm:$0xff] %v1798_v52  ;;  %1927 = vst [vmem:[#allocation9 + $0x290] sm:$0xff] %v1799_v53  ;;  %v1750_v47 = vadd.f32 %v1700_v55, %v3637_v42  ;;  %v1439_v45 = vld [vmem:[#allocation9 + $0x1d0] sm:$0xff]  ;;  %v1440_v34 = vld [vmem:[#allocation9 + $0x1d8] sm:$0xff]  ;;  %v1754_v52 = vadd.f32 %v1700_v55, %v3344_v18 }
 0x2fd   : > { %1928 = vst [vmem:[#allocation9 + $0x298] sm:$0xff] %v1800_v61  ;;  %1929 = vst [vmem:[#allocation9 + $0x2a0] sm:$0xff] %v1801_v62  ;;  %v1441_v53 = vld [vmem:[#allocation9 + $0x1e0] sm:$0xff]  ;;  %v1814_v61 = vadd.f32 %v1700_v55, %v3356_v21  ;;  %v1815_v62 = vadd.f32 %v1700_v55, %v3638_v23  ;;  %v1444_v18 = vld [vmem:[#allocation9 + $0x1f8] sm:$0xff] }
 0x2fe   : > { %1930 = vst [vmem:[#allocation9 + $0x2a8] sm:$0xff] %v1802_v3  ;;  %1931 = vst [vmem:[#allocation9 + $0x2b0] sm:$0xff] %v1803_v48  ;;  %v3639_v3 = vld [vmem:[#allocation57_spill] sm:$0xff]  ;;  %v3640_v48 = vld [vmem:[#allocation58_spill] sm:$0xff] }
 0x2ff   : > { %1932 = vst [vmem:[#allocation9 + $0x2b8] sm:$0xff] %v1804_v19  ;;  %1885 = vst [vmem:[#allocation9 + $0x140] sm:$0xff] %v1757_v15  ;;  %v1817_v40 = vadd.f32 %v1700_v55, %v3639_v3  ;;  %v1819_v10 = vadd.f32 %v1700_v55, %v3640_v48  ;;  %v1503_v21 = vld [vmem:[#allocation9 + $0x3d0] sm:$0xff]  ;;  %v1505_v19 = vld [vmem:[#allocation9 + $0x3e0] sm:$0xff] }
 0x300   : > { %1886 = vst [vmem:[#allocation9 + $0x148] sm:$0xff] %v1758_v44  ;;  %1887 = vst [vmem:[#allocation9 + $0x150] sm:$0xff] %v1759_v17  ;;  %v1506_v15 = vld [vmem:[#allocation9 + $0x3e8] sm:$0xff]  ;;  %v1508_v44 = vld [vmem:[#allocation9 + $0x3f8] sm:$0xff] }
 0x301   : > { %1888 = vst [vmem:[#allocation9 + $0x158] sm:$0xff] %v1760_v37  ;;  %1889 = vst [vmem:[#allocation9 + $0x160] sm:$0xff] %v1761_v2  ;;  %v3641_v54 = vld [vmem:[#allocation41_spill] sm:$0xff] }
 0x302   : > { %1890 = vst [vmem:[#allocation9 + $0x168] sm:$0xff] %v1762_v41  ;;  %1891 = vst [vmem:[#allocation9 + $0x170] sm:$0xff] %v1763_v31  ;;  %v1605_v25 = vmul.f32 %v3641_v54, %v1437_v35  ;;  %v1606_v17 = vmul.f32 %v3641_v54, %v1438_v63  ;;  %v1607_v46 = vmul.f32 %v3641_v54, %v1439_v45  ;;  %v1715_v41 = vpop.permute.xlu1 %1714  ;;  %v1433_v42 = vld [vmem:[#allocation9 + $0x1a0] sm:$0xff] }
 0x303   : > { %1892 = vst [vmem:[#allocation9 + $0x178] sm:$0xff] %v1764_v1  ;;  %1949 = vst [vmem:[#allocation9 + $0x340] sm:$0xff] %v1821_v0  ;;  %v1608_v22 = vmul.f32 %v3641_v54, %v1440_v34  ;;  %v1609_v37 = vmul.f32 %v3641_v54, %v1441_v53  ;;  %v1610_v39 = vmul.f32 %v3641_v54, %v1442_v59  ;;  %v1497_v23 = vld [vmem:[#allocation9 + $0x3a0] sm:$0xff] }
 0x304   : > { %1950 = vst [vmem:[#allocation9 + $0x348] sm:$0xff] %v1822_v32  ;;  %1951 = vst [vmem:[#allocation9 + $0x350] sm:$0xff] %v1823_v56  ;;  %v1611_v2 = vmul.f32 %v3641_v54, %v1443_v24  ;;  %v1612_v27 = vmul.f32 %v3641_v54, %v1444_v18  ;;  %v1669_v50 = vmul.f32 %v3641_v54, %v1501_v28  ;;  %v1429_v32 = vld [vmem:[#allocation9 + $0x180] sm:$0xff]  ;;  %v1500_v18 = vld [vmem:[#allocation9 + $0x3b8] sm:$0xff] }
 0x305   : > { %1952 = vst [vmem:[#allocation9 + $0x358] sm:$0xff] %v1824_v5  ;;  %1953 = vst [vmem:[#allocation9 + $0x360] sm:$0xff] %v1825_v4  ;;  %v1670_v31 = vmul.f32 %v3641_v54, %v1502_v58  ;;  %v1671_v36 = vmul.f32 %v3641_v54, %v1503_v21  ;;  %v1672_v1 = vmul.f32 %v3641_v54, %v1504_v49  ;;  %v1430_v4 = vld [vmem:[#allocation9 + $0x188] sm:$0xff]  ;;  %v1710_v49 = vpop.permute.xlu0 %1709 }
 0x306   : > { %1954 = vst [vmem:[#allocation9 + $0x368] sm:$0xff] %v1826_v8  ;;  %1955 = vst [vmem:[#allocation9 + $0x370] sm:$0xff] %v1827_v13  ;;  %v1673_v55 = vmul.f32 %v3641_v54, %v1505_v19  ;;  %v1674_v30 = vmul.f32 %v3641_v54, %v1506_v15  ;;  %v1675_v0 = vmul.f32 %v3641_v54, %v1507_v60  ;;  %v1431_v8 = vld [vmem:[#allocation9 + $0x190] sm:$0xff]  ;;  %v1432_v13 = vld [vmem:[#allocation9 + $0x198] sm:$0xff] }
 0x307   : > { %1956 = vst [vmem:[#allocation9 + $0x378] sm:$0xff] %v1828_v43  ;;  %1877 = vst [vmem:[#allocation9 + $0x100] sm:$0xff] %v1749_v20  ;;  %v1676_v29 = vmul.f32 %v3641_v54, %v1508_v44  ;;  %v1773_v14 = vadd.f32 %v1715_v41, %v1605_v25  ;;  %v1774_v56 = vadd.f32 %v1715_v41, %v1606_v17  ;;  %v3642_v28 = vld [vmem:[#allocation54_spill] sm:$0xff] }
 0x308   : > { %1878 = vst [vmem:[#allocation9 + $0x108] sm:$0xff] %v1750_v47  ;;  %1879 = vst [vmem:[#allocation9 + $0x110] sm:$0xff] %v1751_v12  ;;  %v1775_v11 = vadd.f32 %v1715_v41, %v1607_v46  ;;  %v1776_v5 = vadd.f32 %v1715_v41, %v1608_v22  ;;  %v1777_v26 = vadd.f32 %v1715_v41, %v1609_v37  ;;  %v1434_v47 = vld [vmem:[#allocation9 + $0x1a8] sm:$0xff]  ;;  %v1435_v12 = vld [vmem:[#allocation9 + $0x1b0] sm:$0xff] }
 0x309   : > { %1880 = vst [vmem:[#allocation9 + $0x118] sm:$0xff] %v1752_v57  ;;  %1881 = vst [vmem:[#allocation9 + $0x120] sm:$0xff] %v1753_v38  ;;  %v1778_v43 = vadd.f32 %v1715_v41, %v1610_v39  ;;  %v1779_v35 = vadd.f32 %v1715_v41, %v1611_v2  ;;  %v1780_v20 = vadd.f32 %v1715_v41, %v1612_v27  ;;  %v1436_v38 = vld [vmem:[#allocation9 + $0x1b8] sm:$0xff] }
 0x30a   : > { %1882 = vst [vmem:[#allocation9 + $0x128] sm:$0xff] %v1754_v52  ;;  %1883 = vst [vmem:[#allocation9 + $0x130] sm:$0xff] %v1755_v51  ;;  %v1837_v57 = vadd.f32 %v1715_v41, %v1669_v50  ;;  %v1838_v63 = vadd.f32 %v1715_v41, %v1670_v31  ;;  %v1839_v45 = vadd.f32 %v1715_v41, %v1671_v36  ;;  %v1493_v52 = vld [vmem:[#allocation9 + $0x380] sm:$0xff]  ;;  %v1494_v51 = vld [vmem:[#allocation9 + $0x388] sm:$0xff] }
 0x30b   : > { %1884 = vst [vmem:[#allocation9 + $0x138] sm:$0xff] %v1756_v6  ;;  %1941 = vst [vmem:[#allocation9 + $0x300] sm:$0xff] %v1813_v33  ;;  %v1840_v34 = vadd.f32 %v1715_v41, %v1672_v1  ;;  %v1841_v6 = vadd.f32 %v1715_v41, %v1673_v55  ;;  %v1842_v53 = vadd.f32 %v1715_v41, %v1674_v30  ;;  %v1495_v33 = vld [vmem:[#allocation9 + $0x390] sm:$0xff] }
 0x30c   : > { %1942 = vst [vmem:[#allocation9 + $0x308] sm:$0xff] %v1814_v61  ;;  %1943 = vst [vmem:[#allocation9 + $0x310] sm:$0xff] %v1815_v62  ;;  %v1843_v59 = vadd.f32 %v1715_v41, %v1675_v0  ;;  %v1844_v24 = vadd.f32 %v1715_v41, %v1676_v29  ;;  %v1496_v61 = vld [vmem:[#allocation9 + $0x398] sm:$0xff]  ;;  %v1498_v62 = vld [vmem:[#allocation9 + $0x3a8] sm:$0xff]  ;;  %v1597_v58 = vmul.f32 %v3642_v28, %v1429_v32 }
 0x30d   : > { %1944 = vst [vmem:[#allocation9 + $0x318] sm:$0xff] %v1816_v16  ;;  %1945 = vst [vmem:[#allocation9 + $0x320] sm:$0xff] %v1817_v40  ;;  %v1499_v16 = vld [vmem:[#allocation9 + $0x3b0] sm:$0xff]  ;;  %v1598_v3 = vmul.f32 %v3642_v28, %v1430_v4  ;;  %v1599_v40 = vmul.f32 %v3642_v28, %v1431_v8  ;;  %v1601_v48 = vmul.f32 %v3642_v28, %v1433_v42 }
 0x30e   : > { %1946 = vst [vmem:[#allocation9 + $0x328] sm:$0xff] %v1818_v9  ;;  %1947 = vst [vmem:[#allocation9 + $0x330] sm:$0xff] %v1819_v10  ;;  %v1600_v9 = vmul.f32 %v3642_v28, %v1432_v13  ;;  %v1602_v10 = vmul.f32 %v3642_v28, %v1434_v47  ;;  %v1604_v21 = vmul.f32 %v3642_v28, %v1436_v38 }
 0x30f   : > { %1948 = vst [vmem:[#allocation9 + $0x338] sm:$0xff] %v1820_v7  ;;  %1901 = vst [vmem:[#allocation9 + $0x1c0] sm:$0xff] %v1773_v14  ;;  %v1603_v7 = vmul.f32 %v3642_v28, %v1435_v12  ;;  %v1661_v19 = vmul.f32 %v3642_v28, %v1493_v52  ;;  %v1662_v15 = vmul.f32 %v3642_v28, %v1494_v51 }
 0x310   : > { %1902 = vst [vmem:[#allocation9 + $0x1c8] sm:$0xff] %v1774_v56  ;;  %1903 = vst [vmem:[#allocation9 + $0x1d0] sm:$0xff] %v1775_v11  ;;  %v1663_v60 = vmul.f32 %v3642_v28, %v1495_v33  ;;  %v1664_v44 = vmul.f32 %v3642_v28, %v1496_v61  ;;  %v1665_v54 = vmul.f32 %v3642_v28, %v1497_v23 }
 0x311   : > { %1904 = vst [vmem:[#allocation9 + $0x1d8] sm:$0xff] %v1776_v5  ;;  %1905 = vst [vmem:[#allocation9 + $0x1e0] sm:$0xff] %v1777_v26  ;;  %v1666_v25 = vmul.f32 %v3642_v28, %v1498_v62  ;;  %v1667_v17 = vmul.f32 %v3642_v28, %v1499_v16  ;;  %v1668_v46 = vmul.f32 %v3642_v28, %v1500_v18 }
 0x312   : > { %1906 = vst [vmem:[#allocation9 + $0x1e8] sm:$0xff] %v1778_v43  ;;  %1907 = vst [vmem:[#allocation9 + $0x1f0] sm:$0xff] %v1779_v35  ;;  %v1765_v22 = vadd.f32 %v1710_v49, %v1597_v58  ;;  %v1766_v37 = vadd.f32 %v1710_v49, %v1598_v3  ;;  %v1767_v39 = vadd.f32 %v1710_v49, %v1599_v40 }
 0x313   : > { %1908 = vst [vmem:[#allocation9 + $0x1f8] sm:$0xff] %v1780_v20  ;;  %1965 = vst [vmem:[#allocation9 + $0x3c0] sm:$0xff] %v1837_v57  ;;  %v1768_v2 = vadd.f32 %v1710_v49, %v1600_v9  ;;  %v1769_v27 = vadd.f32 %v1710_v49, %v1601_v48  ;;  %v1770_v41 = vadd.f32 %v1710_v49, %v1602_v10 }
 0x314   : > { %1966 = vst [vmem:[#allocation9 + $0x3c8] sm:$0xff] %v1838_v63  ;;  %1967 = vst [vmem:[#allocation9 + $0x3d0] sm:$0xff] %v1839_v45  ;;  %v1771_v50 = vadd.f32 %v1710_v49, %v1603_v7  ;;  %v1772_v31 = vadd.f32 %v1710_v49, %v1604_v21  ;;  %v1829_v36 = vadd.f32 %v1710_v49, %v1661_v19 }
 0x315   : > { %1968 = vst [vmem:[#allocation9 + $0x3d8] sm:$0xff] %v1840_v34  ;;  %1969 = vst [vmem:[#allocation9 + $0x3e0] sm:$0xff] %v1841_v6  ;;  %v1830_v1 = vadd.f32 %v1710_v49, %v1662_v15  ;;  %v1831_v55 = vadd.f32 %v1710_v49, %v1663_v60  ;;  %v1832_v30 = vadd.f32 %v1710_v49, %v1664_v44 }
 0x316   : > { %1970 = vst [vmem:[#allocation9 + $0x3e8] sm:$0xff] %v1842_v53  ;;  %1971 = vst [vmem:[#allocation9 + $0x3f0] sm:$0xff] %v1843_v59  ;;  %v1833_v0 = vadd.f32 %v1710_v49, %v1665_v54  ;;  %v1834_v29 = vadd.f32 %v1710_v49, %v1666_v25  ;;  %v1835_v32 = vadd.f32 %v1710_v49, %v1667_v17 }
 0x317   : > { %1972 = vst [vmem:[#allocation9 + $0x3f8] sm:$0xff] %v1844_v24  ;;  %1893 = vst [vmem:[#allocation9 + $0x180] sm:$0xff] %v1765_v22  ;;  %v1836_v14 = vadd.f32 %v1710_v49, %v1668_v46 }
 0x318   : > { %1894 = vst [vmem:[#allocation9 + $0x188] sm:$0xff] %v1766_v37  ;;  %1895 = vst [vmem:[#allocation9 + $0x190] sm:$0xff] %v1767_v39 }
 0x319   : > { %1896 = vst [vmem:[#allocation9 + $0x198] sm:$0xff] %v1768_v2  ;;  %1897 = vst [vmem:[#allocation9 + $0x1a0] sm:$0xff] %v1769_v27 }
 0x31a   : > { %1898 = vst [vmem:[#allocation9 + $0x1a8] sm:$0xff] %v1770_v41  ;;  %1899 = vst [vmem:[#allocation9 + $0x1b0] sm:$0xff] %v1771_v50 }
 0x31b   : > { %1900 = vst [vmem:[#allocation9 + $0x1b8] sm:$0xff] %v1772_v31  ;;  %1957 = vst [vmem:[#allocation9 + $0x380] sm:$0xff] %v1829_v36 }
 0x31c   : > { %1958 = vst [vmem:[#allocation9 + $0x388] sm:$0xff] %v1830_v1  ;;  %1959 = vst [vmem:[#allocation9 + $0x390] sm:$0xff] %v1831_v55 }
 0x31d   : > { %1960 = vst [vmem:[#allocation9 + $0x398] sm:$0xff] %v1832_v30  ;;  %1961 = vst [vmem:[#allocation9 + $0x3a0] sm:$0xff] %v1833_v0 }
 0x31e   : > { %1962 = vst [vmem:[#allocation9 + $0x3a8] sm:$0xff] %v1834_v29  ;;  %1963 = vst [vmem:[#allocation9 + $0x3b0] sm:$0xff] %v1835_v32 }
 0x31f   : > { %1964 = vst [vmem:[#allocation9 + $0x3b8] sm:$0xff] %v1836_v14 }
 0x320 PF: > { %p3506_p4 = scmp.eq.s32.totalorder %s2058_s21, 1  ;;  %s2356_s14 = smov [#allocation9]  }
 0x321   : > { %s1979_s15 = sshll.u32 %s2356_s14, 4  ;;  %s1980_s15 = int_to_ptr.vmem [resolvable:$true] %s1979_s15 }
 0x322   : > { %s2264_s26 = scalar_lea.vmem %s1980_s15, 16384  ;;  %p2271_p7 = scmp.lt.s32.totalorder %s1980_s15, %s1980_s15 }
 0x323   : > { %p2265_p10 = scmp.ne.s32.totalorder %s1980_s15, %s2264_s26  ;;  %p2272_p13 = scmp.lt.s32.totalorder %s2264_s26, %s2264_s26 }
 0x325   : > { %p2266_p11 = pnand %p2265_p10, %p3506_p4  ;;  %p2273_p0 = por %p2272_p13, %p2271_p7 }
 0x327   : > { %p2267_p12 = pneg %p2266_p11 }
 0x329   : > { %p2274_p2 = pnand %p2273_p0, %p2267_p12 }
 0x32b   : > { %2277 = shalt.err (!%p2274_p2)
}
 0x32c   : > { %s2357_s22 = smov 1024   ;;  %s2358_s21 = smov 64  }
 0x32d   : > { %2118 = dma.vmem_to_hbm [thread:$0]  (%p3506_p4), %s1980_s15, 16384, %s3543_s4, [#allocation6], %s2357_s22, %s2357_s22, %s2358_s21  }
 0x32e   : > { %2321 = dma.done.wait (%p3506_p4), [#allocation6], 16384  }
 0x32f   : > { %2323 = vsyncadd (%p3506_p4), [#allocation6], 4294950912 }
 0x330 PF: > { %s19_s20 = sadd.s32 1, %s2346_s20   ;;  %s3644_s15 = smov %s2330_s16 }
 0x331   : > { %p16_p3 = scmp.ge.s32.totalorder %s19_s20, 4   ;;  %s3645_s16 = smov %s2334_s17 }
 0x332   : > { %s3646_s17 = smov %s2463_s13  ;;  %s3647_s18 = smov %s2342_s19 }
 0x333   : > { %s3648_s19 = smov %s3650_s28  ;;  %18 = sbr.rel (!%p16_p3) target bundleno = 6 (0x6), region = 86 }
 0x338   :  { %1995 = vsyncpa [#allocation5], 1 }
 0x339   :  { %1997 = vsyncpa [#allocation5 + $0x1], 1 }
 0x33a   :  { %1998 = vsyncpa [#allocation8], 1 }
 0x33b   :  { %1999 = vsyncpa [#allocation6], 1 }
 0x33c   :  { %2001 = vsyncpa [#allocation6 + $0x1], 1 }

</bundles_post_ra>
